<compile_context>
chip_gen: v5e
topology: v5e:2x2
jax: 0.10.0
libtpu: 0.0.40
codegen_flags: <defaults>
</compile_context>

<pallas_src>
import numpy as np
import jax
import jax.numpy as jnp
from jax.experimental import pallas as pl
from jax.experimental.pallas import tpu as pltpu

HIDDEN = 256
_FMA_K_MAX = 16          # projections with K <= this may skip the MXU ...
_FMA_TB_MAX = 128        # ... but only when the batch tile is this small
_MAX_BATCH_TILE = 512    # per-step rows; keeps per-step overhead amortized


def _round_up(x, m):
    return ((x + m - 1) // m) * m


def _cdiv(a, b):
    return -(-a // b)


# ----------------------------- kernel helpers ------------------------------

def _sigmoid(x):
    # sigmoid(x) == 0.5*tanh(0.5*x) + 0.5 : a single EUP op per element
    # instead of exp + full-precision divide.
    return 0.5 * jnp.tanh(0.5 * x) + 0.5


def _linear(x, w_ref, b_ref):
    # bf16 x bf16 -> f32 accumulation: single-pass native MXU datapath.
    return (jnp.dot(x.astype(jnp.bfloat16), w_ref[...],
                    preferred_element_type=jnp.float32) + b_ref[...])


def _linear_relu(x, w_ref, b_ref):
    return jnp.maximum(_linear(x, w_ref, b_ref), 0.0)


def _project_relu(x, w_ref, b_ref):
    """relu(x @ W + b) where K = x.shape[1] is tiny (4 or input_dim-4).

    Small batch tile: unrolled VPU broadcast-FMAs (MXU fill/drain would dwarf
    the work).  Large batch tile (>= _FMA_TB_MAX rows): the unroll would
    serialize hundreds of VALU cycles while the MXU idles, so use the MXU dot.
    Inputs are rounded to bf16 in both paths (bf16xbf16 products are exact in
    f32), so both paths match the bf16 MXU numerics.
    """
    tb, k_dim = x.shape
    xb = x.astype(jnp.bfloat16)
    if k_dim <= _FMA_K_MAX and tb < _FMA_TB_MAX:
        w = w_ref[...].astype(jnp.float32)
        xf = xb.astype(jnp.float32)
        acc = jnp.broadcast_to(b_ref[...], (tb, w.shape[1]))
        for k in range(k_dim):                       # static unroll
            acc = acc + xf[:, k:k + 1] * w[k:k + 1, :]
        return jnp.maximum(acc, 0.0)
    return jnp.maximum(
        jnp.dot(xb, w_ref[...], preferred_element_type=jnp.float32) + b_ref[...],
        0.0)


# ------------------------------ Pallas kernels -----------------------------

def nn_residual_deep_kernel(x_ref,
                            w0_ref, b0_ref, w1_ref, b1_ref,
                            wf1_ref, bf1_ref, wf2_ref, bf2_ref,
                            wf3_ref, bf3_ref, wf4_ref, bf4_ref,
                            wf5_ref, bf5_ref, out_ref):
    """input_dim != 4 branch of NN_residual.forward."""
    x_in = x_ref[...]                                        # (TB, input_dim) f32
    xl = _project_relu(x_in[:, 0:4], w0_ref, b0_ref)         # relu(project0)
    xh = _project_relu(x_in[:, 4:], w1_ref, b1_ref)          # relu(project1)
    x = xl + xh
    x = x + _linear_relu(x, wf1_ref, bf1_ref)                # x + relu(fc1(x))
    x = x + _linear_relu(x, wf2_ref, bf2_ref)                # x + relu(fc2(x))
    x = x + _linear_relu(x, wf3_ref, bf3_ref)                # x + relu(fc3(x))
    x = x + _linear_relu(x, wf4_ref, bf4_ref)                # x + relu(fc4(x))
    out_ref[...] = _sigmoid(_linear(x, wf5_ref, bf5_ref))


def nn_residual_shallow_kernel(x_ref, w0_ref, b0_ref,
                               wf1_ref, bf1_ref, wf2_ref, bf2_ref, out_ref):
    """input_dim == 4 branch of NN_residual.forward."""
    x = _project_relu(x_ref[...], w0_ref, b0_ref)            # relu(project0)
    x = x + _linear_relu(x, wf1_ref, bf1_ref)                # x + relu(fc1(x))
    out_ref[...] = _sigmoid(_linear(x, wf2_ref, bf2_ref))


# ------------------------------- module wrapper ----------------------------

class NNResidualPallas:
    """Pallas re-implementation of NN_residual (deterministic in-script init)."""

    def __init__(self, input_dim, mask=None, seed=0):
        if mask is None:
            mask = np.ones((1036,)).astype(bool)
        self.input_dim = int(input_dim)
        self.n_branch = int(np.sum(mask))
        # Pad the output-feature axis to a multiple of 128 (lane-dense,
        # unmasked vst); padded columns use zero weights/bias and are sliced.
        self.n_pad = _round_up(self.n_branch, 128)

        key = jax.random.PRNGKey(seed)

        def linear_params(key, fan_in, fan_out, pad_out=None):
            # torch.nn.Linear default init: U(-k, k), k = 1/sqrt(fan_in).
            k = 1.0 / np.sqrt(fan_in)
            kw, kb = jax.random.split(key)
            w = jax.random.uniform(kw, (fan_in, fan_out), jnp.float32, -k, k)
            b = jax.random.uniform(kb, (1, fan_out), jnp.float32, -k, k)
            if pad_out is not None and pad_out != fan_out:
                w = jnp.pad(w, ((0, 0), (0, pad_out - fan_out)))
                b = jnp.pad(b, ((0, 0), (0, pad_out - fan_out)))
            # Weights stored bf16 (native MXU operand dtype); bias stays f32.
            return w.astype(jnp.bfloat16), b

        if self.input_dim == 4:
            keys = jax.random.split(key, 3)
            self.params = [
                *linear_params(keys[0], 4, HIDDEN),                                  # project0
                *linear_params(keys[1], HIDDEN, HIDDEN),                             # fc1
                *linear_params(keys[2], HIDDEN, self.n_branch, pad_out=self.n_pad),  # fc2
            ]
            self._kernel = nn_residual_shallow_kernel
        else:
            keys = jax.random.split(key, 7)
            self.params = [
                *linear_params(keys[0], 4, HIDDEN),                                  # project0
                *linear_params(keys[1], self.input_dim - 4, HIDDEN),                 # project1
                *linear_params(keys[2], HIDDEN, HIDDEN),                             # fc1
                *linear_params(keys[3], HIDDEN, HIDDEN),                             # fc2
                *linear_params(keys[4], HIDDEN, HIDDEN),                             # fc3
                *linear_params(keys[5], HIDDEN, HIDDEN),                             # fc4
                *linear_params(keys[6], HIDDEN, self.n_branch, pad_out=self.n_pad),  # fc5
            ]
            self._kernel = nn_residual_deep_kernel

    @staticmethod
    def _choose_batch_tiling(b):
        """Pick (tb, b_pad) so tiles divide b_pad tightly and v7x gets >=2 steps."""
        b8 = max(8, _round_up(b, 8))
        # >= 2 grid steps for anything beyond tiny batches so both v7x TCs run;
        # more steps only when a tile would exceed _MAX_BATCH_TILE rows.
        min_tiles = 2 if b8 > 16 else 1
        n_tiles = max(min_tiles, _cdiv(b8, _MAX_BATCH_TILE))
        tb = _round_up(_cdiv(b8, n_tiles), 8)
        return tb, tb * n_tiles

    def __call__(self, feature):
        feature = jnp.asarray(feature, jnp.float32)
        b = feature.shape[0]

        tb, b_pad = self._choose_batch_tiling(b)
        if b_pad != b:
            feature = jnp.pad(feature, ((0, b_pad - b), (0, 0)))

        grid = (b_pad // tb,)
        in_specs = [pl.BlockSpec((tb, self.input_dim), lambda i: (i, 0))]
        # Constant block index -> weights/biases DMA'd once, VMEM-resident.
        in_specs += [pl.BlockSpec(p.shape, lambda i: (0, 0)) for p in self.params]
        out_specs = pl.BlockSpec((tb, self.n_pad), lambda i: (i, 0))

        out = pl.pallas_call(
            self._kernel,
            out_shape=jax.ShapeDtypeStruct((b_pad, self.n_pad), jnp.float32),
            grid=grid,
            in_specs=in_specs,
            out_specs=out_specs,
            compiler_params=pltpu.CompilerParams(
                dimension_semantics=("parallel",),      # shard batch over TCs (v7x)
                vmem_limit_bytes=32 * 1024 * 1024,      # cover v5e's 16 MiB default
            ),
        )(feature, *self.params)

        return out[:b, :self.n_branch]

    # Pure-JAX reference (same bf16-operand / f32-accumulate numerics).
    def reference(self, feature):
        x = jnp.asarray(feature, jnp.float32)

        def lin(x, w, b):
            return jnp.dot(x.astype(jnp.bfloat16), w,
                           preferred_element_type=jnp.float32) + b

        if self.input_dim == 4:
            w0, b0, w1, b1, w2, b2 = self.params
            x = jax.nn.relu(lin(x, w0, b0))
            x = x + jax.nn.relu(lin(x, w1, b1))
            out = jax.nn.sigmoid(lin(x, w2, b2))
        else:
            (w0, b0, wp1, bp1, w1, b1, w2, b2,
             w3, b3, w4, b4, w5, b5) = self.params
            xl = jax.nn.relu(lin(x[:, 0:4], w0, b0))
            xh = jax.nn.relu(lin(x[:, 4:self.input_dim], wp1, bp1))
            x = xl + xh
            x = x + jax.nn.relu(lin(x, w1, b1))
            x = x + jax.nn.relu(lin(x, w2, b2))
            x = x + jax.nn.relu(lin(x, w3, b3))
            x = x + jax.nn.relu(lin(x, w4, b4))
            out = jax.nn.sigmoid(lin(x, w5, b5))
        return out[:, :self.n_branch]


# ----------------------------------- main -----------------------------------

if __name__ == "__main__":
    key = jax.random.PRNGKey(0)
    k_deep, k_shallow, k_big = jax.random.split(key, 3)

    # Deep branch: input_dim = 8, small mask -> N_branch = 128, batch = 8.
    batch = 8
    input_dim = 8
    mask = np.zeros((1036,), dtype=bool)
    mask[:128] = True

    model = NNResidualPallas(input_dim, mask=mask, seed=0)
    feature = jax.random.normal(k_deep, (batch, input_dim), jnp.float32)

    out = jax.block_until_ready(model(feature))
    ref = jax.block_until_ready(model.reference(feature))
    assert out.shape == (batch, 128)
    np.testing.assert_allclose(np.asarray(out), np.asarray(ref),
                               rtol=2e-3, atol=2e-3)

    # Shallow branch: input_dim == 4.
    model4 = NNResidualPallas(4, mask=mask, seed=0)
    feature4 = jax.random.normal(k_shallow, (batch, 4), jnp.float32)
    out4 = jax.block_until_ready(model4(feature4))
    ref4 = jax.block_until_ready(model4.reference(feature4))
    assert out4.shape == (batch, 128)
    np.testing.assert_allclose(np.asarray(out4), np.asarray(ref4),
                               rtol=2e-3, atol=2e-3)

    # Larger, ragged batch: exercises tight batch padding + 2-step parallel
    # grid (both v7x TCs) + MXU projection path (tb >= 128).
    big_batch = 300
    feature_big = jax.random.normal(k_big, (big_batch, input_dim), jnp.float32)
    out_big = jax.block_until_ready(model(feature_big))
    ref_big = jax.block_until_ready(model.reference(feature_big))
    assert out_big.shape == (big_batch, 128)
    np.testing.assert_allclose(np.asarray(out_big), np.asarray(ref_big),
                               rtol=2e-3, atol=2e-3)

    print("KERNEL_OK")
</pallas_src>

<mosaic_0001>
module attributes {stable_mosaic.version = 11 : i64} {
  func.func @nn_residual_deep_kernel(%arg0: i32, %arg1: memref<8x8xf32, #tpu.memory_space<vmem>>, %arg2: memref<4x256xbf16, #tpu.memory_space<vmem>>, %arg3: memref<1x256xf32, #tpu.memory_space<vmem>>, %arg4: memref<4x256xbf16, #tpu.memory_space<vmem>>, %arg5: memref<1x256xf32, #tpu.memory_space<vmem>>, %arg6: memref<256x256xbf16, #tpu.memory_space<vmem>>, %arg7: memref<1x256xf32, #tpu.memory_space<vmem>>, %arg8: memref<256x256xbf16, #tpu.memory_space<vmem>>, %arg9: memref<1x256xf32, #tpu.memory_space<vmem>>, %arg10: memref<256x256xbf16, #tpu.memory_space<vmem>>, %arg11: memref<1x256xf32, #tpu.memory_space<vmem>>, %arg12: memref<256x256xbf16, #tpu.memory_space<vmem>>, %arg13: memref<1x256xf32, #tpu.memory_space<vmem>>, %arg14: memref<256x128xbf16, #tpu.memory_space<vmem>>, %arg15: memref<1x128xf32, #tpu.memory_space<vmem>>, %arg16: memref<8x128xf32, #tpu.memory_space<vmem>>) attributes {dimension_semantics = [#tpu.dimension_semantics<parallel>], iteration_bounds = array<i64: 1>, scalar_prefetch = 0 : i64, scratch_operands = 0 : i64, tpu.core_type = #tpu.core_type<tc>, window_params = [{transform_indices = @transform_0, window_bounds = array<i64: 8, 8>}, {pipeline_mode = #tpu.pipeline_mode<synchronous>, transform_indices = @transform_1, window_bounds = array<i64: 4, 256>}, {pipeline_mode = #tpu.pipeline_mode<synchronous>, transform_indices = @transform_2, window_bounds = array<i64: 1, 256>}, {pipeline_mode = #tpu.pipeline_mode<synchronous>, transform_indices = @transform_3, window_bounds = array<i64: 4, 256>}, {pipeline_mode = #tpu.pipeline_mode<synchronous>, transform_indices = @transform_4, window_bounds = array<i64: 1, 256>}, {pipeline_mode = #tpu.pipeline_mode<synchronous>, transform_indices = @transform_5, window_bounds = array<i64: 256, 256>}, {pipeline_mode = #tpu.pipeline_mode<synchronous>, transform_indices = @transform_6, window_bounds = array<i64: 1, 256>}, {pipeline_mode = #tpu.pipeline_mode<synchronous>, transform_indices = @transform_7, window_bounds = array<i64: 256, 256>}, {pipeline_mode = #tpu.pipeline_mode<synchronous>, transform_indices = @transform_8, window_bounds = array<i64: 1, 256>}, {pipeline_mode = #tpu.pipeline_mode<synchronous>, transform_indices = @transform_9, window_bounds = array<i64: 256, 256>}, {pipeline_mode = #tpu.pipeline_mode<synchronous>, transform_indices = @transform_10, window_bounds = array<i64: 1, 256>}, {pipeline_mode = #tpu.pipeline_mode<synchronous>, transform_indices = @transform_11, window_bounds = array<i64: 256, 256>}, {pipeline_mode = #tpu.pipeline_mode<synchronous>, transform_indices = @transform_12, window_bounds = array<i64: 1, 256>}, {pipeline_mode = #tpu.pipeline_mode<synchronous>, transform_indices = @transform_13, window_bounds = array<i64: 256, 128>}, {pipeline_mode = #tpu.pipeline_mode<synchronous>, transform_indices = @transform_14, window_bounds = array<i64: 1, 128>}, {transform_indices = @transform_15, window_bounds = array<i64: 8, 128>}]} {
    %c0 = arith.constant 0 : index
    %c0_0 = arith.constant 0 : index
    %0 = vector.load %arg1[%c0, %c0_0] : memref<8x8xf32, #tpu.memory_space<vmem>>, vector<8x8xf32>
    %1 = vector.extract_strided_slice %0 {offsets = [0, 0], sizes = [8, 4], strides = [1, 1]} : vector<8x8xf32> to vector<8x4xf32>
    %2 = arith.truncf %1 : vector<8x4xf32> to vector<8x4xbf16>
    %c0_1 = arith.constant 0 : index
    %c0_2 = arith.constant 0 : index
    %3 = vector.load %arg2[%c0_1, %c0_2] : memref<4x256xbf16, #tpu.memory_space<vmem>>, vector<4x256xbf16>
    %4 = arith.extf %3 : vector<4x256xbf16> to vector<4x256xf32>
    %5 = arith.extf %2 : vector<8x4xbf16> to vector<8x4xf32>
    %c0_3 = arith.constant 0 : index
    %c0_4 = arith.constant 0 : index
    %6 = vector.load %arg3[%c0_3, %c0_4] : memref<1x256xf32, #tpu.memory_space<vmem>>, vector<1x256xf32>
    %7 = vector.shape_cast %6 : vector<1x256xf32> to vector<1x256xf32>
    %8 = vector.broadcast %7 : vector<1x256xf32> to vector<8x256xf32>
    %9 = vector.extract_strided_slice %5 {offsets = [0, 0], sizes = [8, 1], strides = [1, 1]} : vector<8x4xf32> to vector<8x1xf32>
    %10 = vector.extract_strided_slice %4 {offsets = [0, 0], sizes = [1, 256], strides = [1, 1]} : vector<4x256xf32> to vector<1x256xf32>
    %11 = vector.broadcast %9 : vector<8x1xf32> to vector<8x256xf32>
    %12 = vector.broadcast %10 : vector<1x256xf32> to vector<8x256xf32>
    %13 = arith.mulf %11, %12 : vector<8x256xf32>
    %14 = arith.addf %8, %13 : vector<8x256xf32>
    %15 = vector.extract_strided_slice %5 {offsets = [0, 1], sizes = [8, 1], strides = [1, 1]} : vector<8x4xf32> to vector<8x1xf32>
    %16 = vector.extract_strided_slice %4 {offsets = [1, 0], sizes = [1, 256], strides = [1, 1]} : vector<4x256xf32> to vector<1x256xf32>
    %17 = vector.broadcast %15 : vector<8x1xf32> to vector<8x256xf32>
    %18 = vector.broadcast %16 : vector<1x256xf32> to vector<8x256xf32>
    %19 = arith.mulf %17, %18 : vector<8x256xf32>
    %20 = arith.addf %14, %19 : vector<8x256xf32>
    %21 = vector.extract_strided_slice %5 {offsets = [0, 2], sizes = [8, 1], strides = [1, 1]} : vector<8x4xf32> to vector<8x1xf32>
    %22 = vector.extract_strided_slice %4 {offsets = [2, 0], sizes = [1, 256], strides = [1, 1]} : vector<4x256xf32> to vector<1x256xf32>
    %23 = vector.broadcast %21 : vector<8x1xf32> to vector<8x256xf32>
    %24 = vector.broadcast %22 : vector<1x256xf32> to vector<8x256xf32>
    %25 = arith.mulf %23, %24 : vector<8x256xf32>
    %26 = arith.addf %20, %25 : vector<8x256xf32>
    %27 = vector.extract_strided_slice %5 {offsets = [0, 3], sizes = [8, 1], strides = [1, 1]} : vector<8x4xf32> to vector<8x1xf32>
    %28 = vector.extract_strided_slice %4 {offsets = [3, 0], sizes = [1, 256], strides = [1, 1]} : vector<4x256xf32> to vector<1x256xf32>
    %29 = vector.broadcast %27 : vector<8x1xf32> to vector<8x256xf32>
    %30 = vector.broadcast %28 : vector<1x256xf32> to vector<8x256xf32>
    %31 = arith.mulf %29, %30 : vector<8x256xf32>
    %32 = arith.addf %26, %31 : vector<8x256xf32>
    %cst = arith.constant 0.000000e+00 : f32
    %33 = vector.broadcast %cst : f32 to vector<8x256xf32>
    %34 = arith.maximumf %32, %33 : vector<8x256xf32>
    %35 = vector.extract_strided_slice %0 {offsets = [0, 4], sizes = [8, 4], strides = [1, 1]} : vector<8x8xf32> to vector<8x4xf32>
    %36 = arith.truncf %35 : vector<8x4xf32> to vector<8x4xbf16>
    %c0_5 = arith.constant 0 : index
    %c0_6 = arith.constant 0 : index
    %37 = vector.load %arg4[%c0_5, %c0_6] : memref<4x256xbf16, #tpu.memory_space<vmem>>, vector<4x256xbf16>
    %38 = arith.extf %37 : vector<4x256xbf16> to vector<4x256xf32>
    %39 = arith.extf %36 : vector<8x4xbf16> to vector<8x4xf32>
    %c0_7 = arith.constant 0 : index
    %c0_8 = arith.constant 0 : index
    %40 = vector.load %arg5[%c0_7, %c0_8] : memref<1x256xf32, #tpu.memory_space<vmem>>, vector<1x256xf32>
    %41 = vector.shape_cast %40 : vector<1x256xf32> to vector<1x256xf32>
    %42 = vector.broadcast %41 : vector<1x256xf32> to vector<8x256xf32>
    %43 = vector.extract_strided_slice %39 {offsets = [0, 0], sizes = [8, 1], strides = [1, 1]} : vector<8x4xf32> to vector<8x1xf32>
    %44 = vector.extract_strided_slice %38 {offsets = [0, 0], sizes = [1, 256], strides = [1, 1]} : vector<4x256xf32> to vector<1x256xf32>
    %45 = vector.broadcast %43 : vector<8x1xf32> to vector<8x256xf32>
    %46 = vector.broadcast %44 : vector<1x256xf32> to vector<8x256xf32>
    %47 = arith.mulf %45, %46 : vector<8x256xf32>
    %48 = arith.addf %42, %47 : vector<8x256xf32>
    %49 = vector.extract_strided_slice %39 {offsets = [0, 1], sizes = [8, 1], strides = [1, 1]} : vector<8x4xf32> to vector<8x1xf32>
    %50 = vector.extract_strided_slice %38 {offsets = [1, 0], sizes = [1, 256], strides = [1, 1]} : vector<4x256xf32> to vector<1x256xf32>
    %51 = vector.broadcast %49 : vector<8x1xf32> to vector<8x256xf32>
    %52 = vector.broadcast %50 : vector<1x256xf32> to vector<8x256xf32>
    %53 = arith.mulf %51, %52 : vector<8x256xf32>
    %54 = arith.addf %48, %53 : vector<8x256xf32>
    %55 = vector.extract_strided_slice %39 {offsets = [0, 2], sizes = [8, 1], strides = [1, 1]} : vector<8x4xf32> to vector<8x1xf32>
    %56 = vector.extract_strided_slice %38 {offsets = [2, 0], sizes = [1, 256], strides = [1, 1]} : vector<4x256xf32> to vector<1x256xf32>
    %57 = vector.broadcast %55 : vector<8x1xf32> to vector<8x256xf32>
    %58 = vector.broadcast %56 : vector<1x256xf32> to vector<8x256xf32>
    %59 = arith.mulf %57, %58 : vector<8x256xf32>
    %60 = arith.addf %54, %59 : vector<8x256xf32>
    %61 = vector.extract_strided_slice %39 {offsets = [0, 3], sizes = [8, 1], strides = [1, 1]} : vector<8x4xf32> to vector<8x1xf32>
    %62 = vector.extract_strided_slice %38 {offsets = [3, 0], sizes = [1, 256], strides = [1, 1]} : vector<4x256xf32> to vector<1x256xf32>
    %63 = vector.broadcast %61 : vector<8x1xf32> to vector<8x256xf32>
    %64 = vector.broadcast %62 : vector<1x256xf32> to vector<8x256xf32>
    %65 = arith.mulf %63, %64 : vector<8x256xf32>
    %66 = arith.addf %60, %65 : vector<8x256xf32>
    %cst_9 = arith.constant 0.000000e+00 : f32
    %67 = vector.broadcast %cst_9 : f32 to vector<8x256xf32>
    %68 = arith.maximumf %66, %67 : vector<8x256xf32>
    %69 = arith.addf %34, %68 : vector<8x256xf32>
    %70 = arith.truncf %69 : vector<8x256xf32> to vector<8x256xbf16>
    %c0_10 = arith.constant 0 : index
    %c0_11 = arith.constant 0 : index
    %71 = vector.load %arg6[%c0_10, %c0_11] : memref<256x256xbf16, #tpu.memory_space<vmem>>, vector<256x256xbf16>
    %cst_12 = arith.constant dense<0.000000e+00> : vector<8x256xf32>
    %72 = tpu.matmul %70, %71, %cst_12 {dimension_numbers = #tpu.dot_dimension_numbers<[1], [0], [0], [1], [0, 0, 1, 1], [], []>} : vector<8x256xbf16>, vector<256x256xbf16>, vector<8x256xf32> -> vector<8x256xf32>
    %c0_13 = arith.constant 0 : index
    %c0_14 = arith.constant 0 : index
    %73 = vector.load %arg7[%c0_13, %c0_14] : memref<1x256xf32, #tpu.memory_space<vmem>>, vector<1x256xf32>
    %74 = vector.broadcast %73 : vector<1x256xf32> to vector<8x256xf32>
    %75 = arith.addf %72, %74 : vector<8x256xf32>
    %cst_15 = arith.constant 0.000000e+00 : f32
    %76 = vector.broadcast %cst_15 : f32 to vector<8x256xf32>
    %77 = arith.maximumf %75, %76 : vector<8x256xf32>
    %78 = arith.addf %69, %77 : vector<8x256xf32>
    %79 = arith.truncf %78 : vector<8x256xf32> to vector<8x256xbf16>
    %c0_16 = arith.constant 0 : index
    %c0_17 = arith.constant 0 : index
    %80 = vector.load %arg8[%c0_16, %c0_17] : memref<256x256xbf16, #tpu.memory_space<vmem>>, vector<256x256xbf16>
    %cst_18 = arith.constant dense<0.000000e+00> : vector<8x256xf32>
    %81 = tpu.matmul %79, %80, %cst_18 {dimension_numbers = #tpu.dot_dimension_numbers<[1], [0], [0], [1], [0, 0, 1, 1], [], []>} : vector<8x256xbf16>, vector<256x256xbf16>, vector<8x256xf32> -> vector<8x256xf32>
    %c0_19 = arith.constant 0 : index
    %c0_20 = arith.constant 0 : index
    %82 = vector.load %arg9[%c0_19, %c0_20] : memref<1x256xf32, #tpu.memory_space<vmem>>, vector<1x256xf32>
    %83 = vector.broadcast %82 : vector<1x256xf32> to vector<8x256xf32>
    %84 = arith.addf %81, %83 : vector<8x256xf32>
    %cst_21 = arith.constant 0.000000e+00 : f32
    %85 = vector.broadcast %cst_21 : f32 to vector<8x256xf32>
    %86 = arith.maximumf %84, %85 : vector<8x256xf32>
    %87 = arith.addf %78, %86 : vector<8x256xf32>
    %88 = arith.truncf %87 : vector<8x256xf32> to vector<8x256xbf16>
    %c0_22 = arith.constant 0 : index
    %c0_23 = arith.constant 0 : index
    %89 = vector.load %arg10[%c0_22, %c0_23] : memref<256x256xbf16, #tpu.memory_space<vmem>>, vector<256x256xbf16>
    %cst_24 = arith.constant dense<0.000000e+00> : vector<8x256xf32>
    %90 = tpu.matmul %88, %89, %cst_24 {dimension_numbers = #tpu.dot_dimension_numbers<[1], [0], [0], [1], [0, 0, 1, 1], [], []>} : vector<8x256xbf16>, vector<256x256xbf16>, vector<8x256xf32> -> vector<8x256xf32>
    %c0_25 = arith.constant 0 : index
    %c0_26 = arith.constant 0 : index
    %91 = vector.load %arg11[%c0_25, %c0_26] : memref<1x256xf32, #tpu.memory_space<vmem>>, vector<1x256xf32>
    %92 = vector.broadcast %91 : vector<1x256xf32> to vector<8x256xf32>
    %93 = arith.addf %90, %92 : vector<8x256xf32>
    %cst_27 = arith.constant 0.000000e+00 : f32
    %94 = vector.broadcast %cst_27 : f32 to vector<8x256xf32>
    %95 = arith.maximumf %93, %94 : vector<8x256xf32>
    %96 = arith.addf %87, %95 : vector<8x256xf32>
    %97 = arith.truncf %96 : vector<8x256xf32> to vector<8x256xbf16>
    %c0_28 = arith.constant 0 : index
    %c0_29 = arith.constant 0 : index
    %98 = vector.load %arg12[%c0_28, %c0_29] : memref<256x256xbf16, #tpu.memory_space<vmem>>, vector<256x256xbf16>
    %cst_30 = arith.constant dense<0.000000e+00> : vector<8x256xf32>
    %99 = tpu.matmul %97, %98, %cst_30 {dimension_numbers = #tpu.dot_dimension_numbers<[1], [0], [0], [1], [0, 0, 1, 1], [], []>} : vector<8x256xbf16>, vector<256x256xbf16>, vector<8x256xf32> -> vector<8x256xf32>
    %c0_31 = arith.constant 0 : index
    %c0_32 = arith.constant 0 : index
    %100 = vector.load %arg13[%c0_31, %c0_32] : memref<1x256xf32, #tpu.memory_space<vmem>>, vector<1x256xf32>
    %101 = vector.broadcast %100 : vector<1x256xf32> to vector<8x256xf32>
    %102 = arith.addf %99, %101 : vector<8x256xf32>
    %cst_33 = arith.constant 0.000000e+00 : f32
    %103 = vector.broadcast %cst_33 : f32 to vector<8x256xf32>
    %104 = arith.maximumf %102, %103 : vector<8x256xf32>
    %105 = arith.addf %96, %104 : vector<8x256xf32>
    %106 = arith.truncf %105 : vector<8x256xf32> to vector<8x256xbf16>
    %c0_34 = arith.constant 0 : index
    %c0_35 = arith.constant 0 : index
    %107 = vector.load %arg14[%c0_34, %c0_35] : memref<256x128xbf16, #tpu.memory_space<vmem>>, vector<256x128xbf16>
    %cst_36 = arith.constant dense<0.000000e+00> : vector<8x128xf32>
    %108 = tpu.matmul %106, %107, %cst_36 {dimension_numbers = #tpu.dot_dimension_numbers<[1], [0], [0], [1], [0, 0, 1, 1], [], []>} : vector<8x256xbf16>, vector<256x128xbf16>, vector<8x128xf32> -> vector<8x128xf32>
    %c0_37 = arith.constant 0 : index
    %c0_38 = arith.constant 0 : index
    %109 = vector.load %arg15[%c0_37, %c0_38] : memref<1x128xf32, #tpu.memory_space<vmem>>, vector<1x128xf32>
    %110 = vector.broadcast %109 : vector<1x128xf32> to vector<8x128xf32>
    %111 = arith.addf %108, %110 : vector<8x128xf32>
    %cst_39 = arith.constant 5.000000e-01 : f32
    %112 = vector.broadcast %cst_39 : f32 to vector<8x128xf32>
    %113 = arith.mulf %112, %111 : vector<8x128xf32>
    %114 = math.tanh %113 : vector<8x128xf32>
    %cst_40 = arith.constant 5.000000e-01 : f32
    %115 = vector.broadcast %cst_40 : f32 to vector<8x128xf32>
    %116 = arith.mulf %115, %114 : vector<8x128xf32>
    %cst_41 = arith.constant 5.000000e-01 : f32
    %117 = vector.broadcast %cst_41 : f32 to vector<8x128xf32>
    %118 = arith.addf %116, %117 : vector<8x128xf32>
    %c0_42 = arith.constant 0 : index
    %c0_43 = arith.constant 0 : index
    %119 = vector.load %arg16[%c0_42, %c0_43] : memref<8x128xf32, #tpu.memory_space<vmem>>, vector<8x128xf32>
    tpu.vector_store %arg16[%c0_42, %c0_43], %118 {strides = array<i32>} : memref<8x128xf32, #tpu.memory_space<vmem>>, vector<8x128xf32>,
    return
  }
  func.func @transform_0(%arg0: i32) -> (i32, i32) {
    %c0_i32 = arith.constant 0 : i32
    %c0_i32_0 = arith.constant 0 : i32
    return %arg0, %c0_i32 : i32, i32
  }
  func.func @transform_1(%arg0: i32) -> (i32, i32) {
    %c0_i32 = arith.constant 0 : i32
    %c0_i32_0 = arith.constant 0 : i32
    %c0_i32_1 = arith.constant 0 : i32
    return %c0_i32, %c0_i32_0 : i32, i32
  }
  func.func @transform_2(%arg0: i32) -> (i32, i32) {
    %c0_i32 = arith.constant 0 : i32
    %c0_i32_0 = arith.constant 0 : i32
    %c0_i32_1 = arith.constant 0 : i32
    return %c0_i32, %c0_i32_0 : i32, i32
  }
  func.func @transform_3(%arg0: i32) -> (i32, i32) {
    %c0_i32 = arith.constant 0 : i32
    %c0_i32_0 = arith.constant 0 : i32
    %c0_i32_1 = arith.constant 0 : i32
    return %c0_i32, %c0_i32_0 : i32, i32
  }
  func.func @transform_4(%arg0: i32) -> (i32, i32) {
    %c0_i32 = arith.constant 0 : i32
    %c0_i32_0 = arith.constant 0 : i32
    %c0_i32_1 = arith.constant 0 : i32
    return %c0_i32, %c0_i32_0 : i32, i32
  }
  func.func @transform_5(%arg0: i32) -> (i32, i32) {
    %c0_i32 = arith.constant 0 : i32
    %c0_i32_0 = arith.constant 0 : i32
    %c0_i32_1 = arith.constant 0 : i32
    return %c0_i32, %c0_i32_0 : i32, i32
  }
  func.func @transform_6(%arg0: i32) -> (i32, i32) {
    %c0_i32 = arith.constant 0 : i32
    %c0_i32_0 = arith.constant 0 : i32
    %c0_i32_1 = arith.constant 0 : i32
    return %c0_i32, %c0_i32_0 : i32, i32
  }
  func.func @transform_7(%arg0: i32) -> (i32, i32) {
    %c0_i32 = arith.constant 0 : i32
    %c0_i32_0 = arith.constant 0 : i32
    %c0_i32_1 = arith.constant 0 : i32
    return %c0_i32, %c0_i32_0 : i32, i32
  }
  func.func @transform_8(%arg0: i32) -> (i32, i32) {
    %c0_i32 = arith.constant 0 : i32
    %c0_i32_0 = arith.constant 0 : i32
    %c0_i32_1 = arith.constant 0 : i32
    return %c0_i32, %c0_i32_0 : i32, i32
  }
  func.func @transform_9(%arg0: i32) -> (i32, i32) {
    %c0_i32 = arith.constant 0 : i32
    %c0_i32_0 = arith.constant 0 : i32
    %c0_i32_1 = arith.constant 0 : i32
    return %c0_i32, %c0_i32_0 : i32, i32
  }
  func.func @transform_10(%arg0: i32) -> (i32, i32) {
    %c0_i32 = arith.constant 0 : i32
    %c0_i32_0 = arith.constant 0 : i32
    %c0_i32_1 = arith.constant 0 : i32
    return %c0_i32, %c0_i32_0 : i32, i32
  }
  func.func @transform_11(%arg0: i32) -> (i32, i32) {
    %c0_i32 = arith.constant 0 : i32
    %c0_i32_0 = arith.constant 0 : i32
    %c0_i32_1 = arith.constant 0 : i32
    return %c0_i32, %c0_i32_0 : i32, i32
  }
  func.func @transform_12(%arg0: i32) -> (i32, i32) {
    %c0_i32 = arith.constant 0 : i32
    %c0_i32_0 = arith.constant 0 : i32
    %c0_i32_1 = arith.constant 0 : i32
    return %c0_i32, %c0_i32_0 : i32, i32
  }
  func.func @transform_13(%arg0: i32) -> (i32, i32) {
    %c0_i32 = arith.constant 0 : i32
    %c0_i32_0 = arith.constant 0 : i32
    %c0_i32_1 = arith.constant 0 : i32
    return %c0_i32, %c0_i32_0 : i32, i32
  }
  func.func @transform_14(%arg0: i32) -> (i32, i32) {
    %c0_i32 = arith.constant 0 : i32
    %c0_i32_0 = arith.constant 0 : i32
    %c0_i32_1 = arith.constant 0 : i32
    return %c0_i32, %c0_i32_0 : i32, i32
  }
  func.func @transform_15(%arg0: i32) -> (i32, i32) {
    %c0_i32 = arith.constant 0 : i32
    %c0_i32_0 = arith.constant 0 : i32
    return %arg0, %c0_i32 : i32, i32
  }
}

</mosaic_0001>

<bundles_post_ra>
// kernel: tpu_custom_call.1
= control target key start
LH: loop header
LB: loop body
LE: loop exit
PB: predicated region body
PF: predicated region fallthrough
CT: control target
= control target key end

     0   :  { %20 = vsyncpa [#allocation3], 0  ;;  %s2814_s0 = inlined_call_operand.hbm [shape: f32[8,8], index: 0, kind: input, shape index: {}]   ;;  %s2815_s1 = inlined_call_operand.hbm [shape: bf16[4,256], index: 1, kind: input, shape index: {}]   ;;  %s2816_s2 = inlined_call_operand.hbm [shape: f32[1,256], index: 2, kind: input, shape index: {}]   ;;  %s2817_s3 = inlined_call_operand.hbm [shape: bf16[4,256], index: 3, kind: input, shape index: {}]   ;;  %s2818_s4 = inlined_call_operand.vmem [shape: f32[1,256], index: 4, kind: input, shape index: {}]   ;;  %s2819_s5 = inlined_call_operand.hbm [shape: bf16[256,256], index: 5, kind: input, shape index: {}]   ;;  %s2820_s6 = inlined_call_operand.vmem [shape: f32[1,256], index: 6, kind: input, shape index: {}]   ;;  %s2821_s7 = inlined_call_operand.hbm [shape: bf16[256,256], index: 7, kind: input, shape index: {}]   ;;  %s2822_s8 = inlined_call_operand.vmem [shape: f32[1,256], index: 8, kind: input, shape index: {}]   ;;  %s2823_s9 = inlined_call_operand.hbm [shape: bf16[256,256], index: 9, kind: input, shape index: {}]   ;;  %s2824_s10 = inlined_call_operand.vmem [shape: f32[1,256], index: 10, kind: input, shape index: {}]   ;;  %s2825_s11 = inlined_call_operand.hbm [shape: bf16[256,256], index: 11, kind: input, shape index: {}]   ;;  %s2826_s12 = inlined_call_operand.vmem [shape: f32[1,256], index: 12, kind: input, shape index: {}]   ;;  %s2827_s13 = inlined_call_operand.hbm [shape: bf16[256,128], index: 13, kind: input, shape index: {}]   ;;  %s2828_s14 = inlined_call_operand.vmem [shape: f32[1,128], index: 14, kind: input, shape index: {}]   ;;  %s2829_s15 = inlined_call_operand.hbm [shape: f32[8,128], index: 15, kind: output, shape index: {}]  }
   0x1   :  { %21 = vsyncpa [#allocation6], 0 }
   0x2   :  { %22 = vsyncpa [#allocation9], 0 }
   0x3   :  { %23 = vsyncpa [#allocation12], 0 }
   0x4   :  { %24 = vsyncpa [#allocation15], 0  ;;  %s42_s20 = sshll.u32 %s2815_s1, 4  ;;  %s43_s20 = int_to_ptr.hbm [resolvable:$true] %s42_s20 }
   0x5   :  { %25 = vsyncpa [#allocation4], 0  ;;  %s2539_s21 = smov [#allocation5]   ;;  %s64_s25 = sshll.u32 %s2817_s3, 4  ;;  %s65_s25 = int_to_ptr.hbm [resolvable:$true] %s64_s25 }
   0x6   :  { %s44_s22 = sshll.u32 %s2539_s21, 4  ;;  %s2540_s26 = smov [#allocation8]   ;;  %s45_s22 = int_to_ptr.vmem [resolvable:$true] %s44_s22 }
   0x7   :  { %47 = dma.hbm_to_vmem [thread:$0]  %s43_s20, 64, %s45_s22, [#allocation6]  }
   0x8   :  { %s66_s27 = sshll.u32 %s2540_s26, 4  ;;  %s91_s30 = sshll.u32 %s2821_s7, 4  ;;  %s67_s27 = int_to_ptr.vmem [resolvable:$true] %s66_s27  ;;  %s92_s30 = int_to_ptr.hbm [resolvable:$true] %s91_s30 }
   0x9   :  { %69 = dma.hbm_to_vmem [thread:$0]  %s65_s25, 64, %s67_s27, [#allocation9]  }
   0xa   :  { %s2541_s1 = smov [#allocation11]   ;;  %s121_s19 = sshll.u32 %s2825_s11, 4  ;;  %s122_s19 = int_to_ptr.hbm [resolvable:$true] %s121_s19 }
   0xb   :  { %s93_s16 = sshll.u32 %s2541_s1, 4  ;;  %s2542_s21 = smov 128   ;;  %s94_s16 = int_to_ptr.vmem [resolvable:$true] %s93_s16 }
   0xc   :  { %s2543_s3 = smov 8   ;;  %s2544_s20 = smov [#allocation14]  }
   0xd   :  { %99 = dma.hbm_to_vmem [thread:$0]  %s92_s30, 4096, %s94_s16, [#allocation12], %s2542_s21, %s2542_s21, %s2543_s3  }
   0xe   :  { %s123_s22 = sshll.u32 %s2544_s20, 4  ;;  %s31_s7 = sshll.u32 %s2814_s0, 4  ;;  %s124_s22 = int_to_ptr.vmem [resolvable:$true] %s123_s22  ;;  %s32_s7 = int_to_ptr.hbm [resolvable:$true] %s31_s7 }
   0xf   :  { %129 = dma.hbm_to_vmem [thread:$0]  %s122_s19, 4096, %s124_s22, [#allocation15], %s2542_s21, %s2542_s21, %s2543_s3  }
  0x10   :  { %s53_s26 = sshll.u32 %s2816_s2, 4  ;;  %s2545_s27 = smov [#allocation2]   ;;  %s54_s26 = int_to_ptr.hbm [resolvable:$true] %s53_s26 }
  0x11   :  { %s33_s28 = sshll.u32 %s2545_s27, 4  ;;  %s2546_s29 = smov [#allocation7]   ;;  %s34_s28 = int_to_ptr.vmem [resolvable:$true] %s33_s28 }
  0x12   :  { %36 = dma.hbm_to_vmem [thread:$0]  %s32_s7, 128, %s34_s28, [#allocation3]  }
  0x13   :  { %s55_s30 = sshll.u32 %s2546_s29, 4  ;;  %s76_s0 = sshll.u32 %s2819_s5, 4  ;;  %s56_s30 = int_to_ptr.vmem [resolvable:$true] %s55_s30  ;;  %s77_s0 = int_to_ptr.hbm [resolvable:$true] %s76_s0 }
  0x14   :  { %58 = dma.hbm_to_vmem [thread:$0]  %s54_s26, 32, %s56_s30, [#allocation6]  }
  0x15   :  { %s106_s19 = sshll.u32 %s2823_s9, 4  ;;  %s2547_s20 = smov [#allocation10]   ;;  %s107_s19 = int_to_ptr.hbm [resolvable:$true] %s106_s19 }
  0x16   :  { %s78_s2 = sshll.u32 %s2547_s20, 4  ;;  %s2548_s22 = smov [#allocation13]   ;;  %s79_s2 = int_to_ptr.vmem [resolvable:$true] %s78_s2 }
  0x17   :  { %84 = dma.hbm_to_vmem [thread:$0]  %s77_s0, 4096, %s79_s2, [#allocation9], %s2542_s21, %s2542_s21, %s2543_s3  }
  0x18   :  { %s108_s23 = sshll.u32 %s2548_s22, 4  ;;  %s136_s5 = sshll.u32 %s2827_s13, 4  ;;  %s109_s23 = int_to_ptr.vmem [resolvable:$true] %s108_s23  ;;  %s137_s5 = int_to_ptr.hbm [resolvable:$true] %s136_s5 }
  0x19   :  { %114 = dma.hbm_to_vmem [thread:$0]  %s107_s19, 4096, %s109_s23, [#allocation12], %s2542_s21, %s2542_s21, %s2543_s3  }
  0x1a   :  { %s2549_s9 = smov [#allocation16]   ;;  %s2550_s25 = smov 64  }
  0x1b   :  { %s138_s11 = sshll.u32 %s2549_s9, 4  ;;  %s2551_s26 = smov 4   ;;  %s139_s11 = int_to_ptr.vmem [resolvable:$true] %s138_s11 }
  0x1c   :  { %144 = dma.hbm_to_vmem [thread:$0]  %s137_s5, 2048, %s139_s11, [#allocation15], %s2550_s25, %s2550_s25, %s2551_s26  }
  0x1d   :  { %2527 = dma.done.wait [#allocation3], 128  }
  0x1e   :  { %2528 = vsyncadd [#allocation3], 4294967168 }
  0x1f   :  { %2529 = dma.done.wait [#allocation6], 96  }
  0x20   :  { %2530 = vsyncadd [#allocation6], 4294967200 }
  0x21   :  { %2531 = dma.done.wait [#allocation9], 4160  }
  0x22   :  { %2532 = vsyncadd [#allocation9], 4294963136 }
  0x23   :  { %2533 = dma.done.wait [#allocation12], 8192  }
  0x24   :  { %2534 = vsyncadd [#allocation12], 4294959104 }
  0x25   :  { %2535 = dma.done.wait [#allocation15], 6144  }
  0x26   :  { %2536 = vsyncadd [#allocation15], 4294961152  ;;  %v2552_v0 = vmov 1   ;;  %v2553_v1 = vmov 0   ;;  %v2554_v2 = vmov 2   ;;  %v183_v3 = vld [vmem:[#allocation2] sm:$0xff] }
  0x27   :  { %2277 = vset.pattern.permute.xlu1 %v2552_v0  ;;  %2275 = vset.pattern.permute.xlu0 %v2553_v1  ;;  %v1591_v4 = vld [vmem:[#allocation10 + $0x70] sm:$0xf]  ;;  %v2124_v5 = vld [vmem:[#allocation10 + $0x74] sm:$0xf0]  ;;  %v184_v6 = vpack.c.bf16 %v183_v3, %v183_v3  ;;  %v2123_v10 = vld [vmem:[#allocation10 + $0x74] sm:$0xf] }
  0x28   :  { %2279 = vset.pattern.permute.xlu2 %v2554_v2  ;;  %v1592_v7 = vor.u32 %v2124_v5, %v1591_v4  ;;  %v1655_v8 = vld [vmem:[#allocation10 + $0xf0] sm:$0xf]  ;;  %v2140_v9 = vld [vmem:[#allocation10 + $0xf4] sm:$0xf0]  ;;  %v1593_v12 = vld [vmem:[#allocation10 + $0x78] sm:$0xf0] }
  0x29   :  { %v1656_v11 = vor.u32 %v2140_v9, %v1655_v8  ;;  %v2139_v13 = vld [vmem:[#allocation10 + $0xf4] sm:$0xf]  ;;  %v1657_v14 = vld [vmem:[#allocation10 + $0xf8] sm:$0xf0]  ;;  %v187_v15 = vunpack.c.l.bf16 %v184_v6  ;;  %v1596_v16 = vor.u32 %v2123_v10, %v1593_v12  ;;  %v2555_v18 = vmov 5   ;;  %s2560_s1 = smov [#allocation17]  }
  0x2a   :  { %523 = vmatpush.bf16.msra.mxu0 %v1592_v7  ;;  %v1660_v17 = vor.u32 %v2139_v13, %v1657_v14  ;;  %v2556_v19 = vmov 4   ;;  %v2557_v20 = vmov 6   ;;  %v2558_v21 = vmov 3   ;;  %v1583_v23 = vld [vmem:[#allocation10 + $0x60] sm:$0xf]  ;;  %s1517_s16 = sshll.u32 %s2560_s1, 4  ;;  %s1518_s16 = int_to_ptr.vmem [resolvable:$true] %s1517_s16 }
  0x2b   :  { %536 = vmatpush.bf16.msra.mxu1 %v1656_v11  ;;  %211 = vperm.xlu1 %2277, %v187_v15   ;;  %v2559_v22 = vmov 7   ;;  %v2122_v24 = vld [vmem:[#allocation10 + $0x64] sm:$0xf0]  ;;  %v1647_v26 = vld [vmem:[#allocation10 + $0xe0] sm:$0xf]  ;;  %s1519_s18 = sshll.u32 %s2829_s15, 4  ;;  %s1520_s18 = int_to_ptr.hbm [resolvable:$true] %s1519_s18 }
  0x2c   :  { %196 = vperm.xlu0 %2275, %v187_v15   ;;  %225 = vperm.xlu2 %2279, %v187_v15   ;;  %v1584_v25 = vor.u32 %v2122_v24, %v1583_v23  ;;  %v2138_v27 = vld [vmem:[#allocation10 + $0xe4] sm:$0xf0]  ;;  %v2121_v29 = vld [vmem:[#allocation10 + $0x64] sm:$0xf]  ;;  %v1585_v30 = vld [vmem:[#allocation10 + $0x68] sm:$0xf0] }
  0x2d   :  { %549 = vmatpush.bf16.msra.mxu2 %v1596_v16  ;;  %562 = vmatpush.bf16.msra.mxu3 %v1660_v17  ;;  %v1648_v28 = vor.u32 %v2138_v27, %v1647_v26  ;;  %v185_v31 = vld [vmem:[#allocation5] sm:$0xf]  ;;  %v1588_v32 = vor.u32 %v2121_v29, %v1585_v30  ;;  %v2137_v33 = vld [vmem:[#allocation10 + $0xe4] sm:$0xf]  ;;  %v1649_v34 = vld [vmem:[#allocation10 + $0xe8] sm:$0xf0] }
  0x2e   :  { %524 = vmatpush.bf16.msra.mxu0 %v1584_v25  ;;  %v1652_v35 = vor.u32 %v2137_v33, %v1649_v34  ;;  %v1575_v36 = vld [vmem:[#allocation10 + $0x50] sm:$0xf]  ;;  %v2120_v37 = vld [vmem:[#allocation10 + $0x54] sm:$0xf0]  ;;  %v2119_v41 = vld [vmem:[#allocation10 + $0x54] sm:$0xf]  ;;  %v2680_v48 = vunpack.c.l.bf16 %v185_v31 }
  0x2f   :  { %537 = vmatpush.bf16.msra.mxu1 %v1648_v28  ;;  %v1639_v38 = vld [vmem:[#allocation10 + $0xd0] sm:$0xf]  ;;  %v1576_v39 = vor.u32 %v2120_v37, %v1575_v36  ;;  %v2136_v40 = vld [vmem:[#allocation10 + $0xd4] sm:$0xf0]  ;;  %v1577_v42 = vld [vmem:[#allocation10 + $0x58] sm:$0xf0] }
  0x30   :  { %v1640_v43 = vor.u32 %v2136_v40, %v1639_v38  ;;  %v1580_v44 = vor.u32 %v2119_v41, %v1577_v42  ;;  %v2135_v45 = vld [vmem:[#allocation10 + $0xd4] sm:$0xf]  ;;  %v1641_v46 = vld [vmem:[#allocation10 + $0xd8] sm:$0xf0]  ;;  %v1567_v49 = vld [vmem:[#allocation10 + $0x40] sm:$0xf] }
  0x31   :  { %550 = vmatpush.bf16.msra.mxu2 %v1588_v32  ;;  %563 = vmatpush.bf16.msra.mxu3 %v1652_v35  ;;  %v1644_v47 = vor.u32 %v2135_v45, %v1641_v46  ;;  %v2118_v50 = vld [vmem:[#allocation10 + $0x44] sm:$0xf0]  ;;  %v1631_v51 = vld [vmem:[#allocation10 + $0xc0] sm:$0xf]  ;;  %v2117_v55 = vld [vmem:[#allocation10 + $0x44] sm:$0xf] }
  0x32   :  { %525 = vmatpush.bf16.msra.mxu0 %v1576_v39  ;;  %v2134_v52 = vld [vmem:[#allocation10 + $0xc4] sm:$0xf0]  ;;  %v1568_v53 = vor.u32 %v2118_v50, %v1567_v49  ;;  %v1569_v56 = vld [vmem:[#allocation10 + $0x48] sm:$0xf0]  ;;  %v2133_v57 = vld [vmem:[#allocation10 + $0xc4] sm:$0xf] }
  0x33   :  { %2278 = vset.pattern.permute.xlu1 %v2555_v18  ;;  %538 = vmatpush.bf16.msra.mxu1 %v1640_v43  ;;  %v1632_v54 = vor.u32 %v2134_v52, %v1631_v51  ;;  %v228_v58 = vperm.slane %v2680_v48, 2  ;;  %v214_v59 = vperm.slane %v2680_v48, 1  ;;  %v1633_v60 = vld [vmem:[#allocation10 + $0xc8] sm:$0xf0]  ;;  %v254_v61 = vld [vmem:[#allocation8] sm:$0xf]  ;;  %v1572_v62 = vor.u32 %v2117_v55, %v1569_v56 }
  0x34   :  { %2276 = vset.pattern.permute.xlu0 %v2556_v19  ;;  %278 = vperm.xlu1 %2278, %v187_v15   ;;  %v1636_v63 = vor.u32 %v2133_v57, %v1633_v60  ;;  %v1559_v0 = vld [vmem:[#allocation10 + $0x30] sm:$0xf]  ;;  %v2116_v1 = vld [vmem:[#allocation10 + $0x34] sm:$0xf0]  ;;  %v2115_v5 = vld [vmem:[#allocation10 + $0x34] sm:$0xf] }
  0x35   :  { %263 = vperm.xlu0 %2276, %v187_v15   ;;  %2280 = vset.pattern.permute.xlu2 %v2557_v20  ;;  %v1560_v2 = vor.u32 %v2116_v1, %v1559_v0  ;;  %v1623_v3 = vld [vmem:[#allocation10 + $0xb0] sm:$0xf]  ;;  %v2132_v4 = vld [vmem:[#allocation10 + $0xb4] sm:$0xf0]  ;;  %v1561_v7 = vld [vmem:[#allocation10 + $0x38] sm:$0xf0] }
  0x36   :  { %292 = vperm.xlu2 %2280, %v187_v15   ;;  %551 = vmatpush.bf16.msra.mxu2 %v1580_v44  ;;  %v1624_v6 = vor.u32 %v2132_v4, %v1623_v3  ;;  %v2131_v8 = vld [vmem:[#allocation10 + $0xb4] sm:$0xf]  ;;  %v1625_v9 = vld [vmem:[#allocation10 + $0xb8] sm:$0xf0]  ;;  %v229_v10 = vperm.slane %v2680_v48, 6  ;;  %v1564_v11 = vor.u32 %v2115_v5, %v1561_v7  ;;  %v2687_v20 = vperm.slane %v228_v58, 2 }
  0x37   :  { %564 = vmatpush.bf16.msra.mxu3 %v1644_v47  ;;  %526 = vmatpush.bf16.msra.mxu0 %v1568_v53  ;;  %v1628_v12 = vor.u32 %v2131_v8, %v1625_v9  ;;  %v1551_v13 = vld [vmem:[#allocation10 + $0x20] sm:$0xf]  ;;  %v2114_v14 = vld [vmem:[#allocation10 + $0x24] sm:$0xf0]  ;;  %v2113_v19 = vld [vmem:[#allocation10 + $0x24] sm:$0xf] }
  0x38   :  { %539 = vmatpush.bf16.msra.mxu1 %v1632_v54  ;;  %v1552_v16 = vor.u32 %v2114_v14, %v1551_v13  ;;  %v1615_v17 = vld [vmem:[#allocation10 + $0xa0] sm:$0xf]  ;;  %v2130_v18 = vld [vmem:[#allocation10 + $0xa4] sm:$0xf0]  ;;  %v1553_v23 = vld [vmem:[#allocation10 + $0x28] sm:$0xf0] }
  0x39   :  { %v2129_v24 = vld [vmem:[#allocation10 + $0xa4] sm:$0xf]  ;;  %v2690_v25 = vperm.slane %v214_v59, 1  ;;  %v200_v26 = vperm.slane %v2680_v48, 0  ;;  %v201_v27 = vperm.slane %v2680_v48, 4  ;;  %v1556_v28 = vor.u32 %v2113_v19, %v1553_v23 }
  0x3a   :  { %552 = vmatpush.bf16.msra.mxu2 %v1572_v62  ;;  %v1617_v29 = vld [vmem:[#allocation10 + $0xa8] sm:$0xf0]  ;;  %v1543_v31 = vld [vmem:[#allocation10 + $0x10] sm:$0xf]  ;;  %v2112_v32 = vld [vmem:[#allocation10 + $0x14] sm:$0xf0] }
  0x3b   :  { %565 = vmatpush.bf16.msra.mxu3 %v1636_v63  ;;  %527 = vmatpush.bf16.msra.mxu0 %v1560_v2  ;;  %v1620_v30 = vor.u32 %v2129_v24, %v1617_v29  ;;  %v1607_v33 = vld [vmem:[#allocation10 + $0x90] sm:$0xf]  ;;  %v2128_v36 = vld [vmem:[#allocation10 + $0x94] sm:$0xf0]  ;;  %v2111_v37 = vld [vmem:[#allocation10 + $0x14] sm:$0xf]  ;;  %v1544_v38 = vor.u32 %v2112_v32, %v1543_v31 }
  0x3c   :  { %2281 = vset.pattern.permute.xlu1 %v2558_v21  ;;  %540 = vmatpush.bf16.msra.mxu1 %v1624_v6  ;;  %v215_v21 = vperm.slane %v2680_v48, 5  ;;  %v1608_v39 = vor.u32 %v2128_v36, %v1607_v33  ;;  %v1545_v40 = vld [vmem:[#allocation10 + $0x18] sm:$0xf0]  ;;  %v2127_v41 = vld [vmem:[#allocation10 + $0x94] sm:$0xf]  ;;  %v204_v63 = vperm.slane %v200_v26, 0 }
  0x3d   :  { %2283 = vset.pattern.permute.xlu0 %v2559_v22  ;;  %239 = vperm.xlu1 %2281, %v187_v15   ;;  %v1609_v42 = vld [vmem:[#allocation10 + $0x98] sm:$0xf0]  ;;  %v2696_v43 = vld [vmem:[#allocation7] sm:$0x3]  ;;  %v1548_v46 = vor.u32 %v2111_v37, %v1545_v40  ;;  %v2703_v49 = vld [vmem:[%s2818_s4] sm:$0x3] }
  0x3e   :  { %2282 = vset.pattern.permute.xlu2 %v2559_v22  ;;  %v1616_v22 = vor.u32 %v2130_v18, %v1615_v17  ;;  %553 = vmatpush.bf16.msra.mxu2 %v1564_v11  ;;  %v1612_v47 = vor.u32 %v2127_v41, %v1609_v42  ;;  %v1535_v50 = vld [vmem:[#allocation10] sm:$0xf]  ;;  %v2110_v51 = vld [vmem:[#allocation10 + $0x4] sm:$0xf0]  ;;  %v2109_v56 = vld [vmem:[#allocation10 + $0x4] sm:$0xf] }
  0x3f   :  { %306 = vperm.xlu2 %2282, %v187_v15   ;;  %v2685_v15 = vunpack.c.l.bf16 %v254_v61  ;;  %566 = vmatpush.bf16.msra.mxu3 %v1628_v12  ;;  %v1599_v52 = vld [vmem:[#allocation10 + $0x80] sm:$0xf]  ;;  %v1536_v54 = vor.u32 %v2110_v51, %v1535_v50  ;;  %v2126_v55 = vld [vmem:[#allocation10 + $0x84] sm:$0xf0]  ;;  %v1537_v57 = vld [vmem:[#allocation10 + $0x8] sm:$0xf0] }
  0x40   :  { %528 = vmatpush.bf16.msra.mxu0 %v1552_v16  ;;  %541 = vmatpush.bf16.msra.mxu1 %v1616_v22  ;;  %v2707_v58 = vperm.slane %v215_v21, 1  ;;  %v1600_v60 = vor.u32 %v2126_v55, %v1599_v52  ;;  %v2125_v61 = vld [vmem:[#allocation10 + $0x84] sm:$0xf]  ;;  %v1601_v62 = vld [vmem:[#allocation10 + $0x88] sm:$0xf0]  ;;  %v2710_v0 = vperm.slane %v201_v27, 0  ;;  %v1540_v1 = vor.u32 %v2109_v56, %v1537_v57 }
  0x41   :  { %v295_v34 = vperm.slane %v2685_v15, 2  ;;  %v296_v35 = vperm.slane %v2685_v15, 6  ;;  %v281_v44 = vperm.slane %v2685_v15, 1  ;;  %v282_v45 = vperm.slane %v2685_v15, 5  ;;  %v1719_v17 = vld [vmem:[#allocation11 + $0x70] sm:$0xf] }
  0x42   :  { %554 = vmatpush.bf16.msra.mxu2 %v1556_v28  ;;  %v267_v59 = vperm.slane %v2685_v15, 0  ;;  %v1604_v2 = vor.u32 %v2125_v61, %v1601_v62  ;;  %v190_v3 = vperm.slane %v2696_v43, 0  ;;  %v191_v4 = vperm.slane %v2696_v43, 1  ;;  %v2156_v18 = vld [vmem:[#allocation11 + $0x74] sm:$0xf0] }
  0x43   :  { %567 = vmatpush.bf16.msra.mxu3 %v1620_v30  ;;  %v2714_v5 = vperm.slane %v295_v34, 2  ;;  %v268_v6 = vperm.slane %v2685_v15, 4  ;;  %v2717_v7 = vperm.slane %v296_v35, 2  ;;  %v2719_v8 = vperm.slane %v281_v44, 1  ;;  %v2155_v19 = vld [vmem:[#allocation11 + $0x74] sm:$0xf] }
  0x44   :  { %529 = vmatpush.bf16.msra.mxu0 %v1544_v38  ;;  %542 = vmatpush.bf16.msra.mxu1 %v1608_v39  ;;  %v2721_v9 = vperm.slane %v282_v45, 1  ;;  %v258_v11 = vperm.slane %v2703_v49, 0  ;;  %v259_v12 = vperm.slane %v2703_v49, 1  ;;  %v2725_v13 = vperm.slane %v267_v59, 0  ;;  %v1721_v22 = vld [vmem:[#allocation11 + $0x78] sm:$0xf0] }
  0x45   :  { %v309_v14 = vperm.slane %v2685_v15, 3  ;;  %v310_v16 = vperm.slane %v2685_v15, 7  ;;  %v1720_v21 = vor.u32 %v2156_v18, %v1719_v17  ;;  %v1711_v23 = vld [vmem:[#allocation11 + $0x60] sm:$0xf]  ;;  %v2154_v24 = vld [vmem:[#allocation11 + $0x64] sm:$0xf0]  ;;  %v1724_v28 = vor.u32 %v2155_v19, %v1721_v22 }
  0x46   :  { %555 = vmatpush.bf16.msra.mxu2 %v1548_v46  ;;  %v2153_v29 = vld [vmem:[#allocation11 + $0x64] sm:$0xf]  ;;  %v1713_v30 = vld [vmem:[#allocation11 + $0x68] sm:$0xf0]  ;;  %v1783_v31 = vld [vmem:[#allocation11 + $0xf0] sm:$0xf]  ;;  %v1712_v32 = vor.u32 %v2154_v24, %v1711_v23 }
  0x47   :  { %568 = vmatpush.bf16.msra.mxu3 %v1612_v47  ;;  %v2172_v33 = vld [vmem:[#allocation11 + $0xf4] sm:$0xf0]  ;;  %v2171_v15 = vld [vmem:[#allocation11 + $0xf4] sm:$0xf]  ;;  %v1785_v34 = vld [vmem:[#allocation11 + $0xf8] sm:$0xf0]  ;;  %v1716_v36 = vor.u32 %v2153_v29, %v1713_v30 }
  0x48   :  { %530 = vmatpush.bf16.msra.mxu0 %v1536_v54  ;;  %543 = vmatpush.bf16.msra.mxu1 %v1600_v60  ;;  %v1784_v37 = vor.u32 %v2172_v33, %v1783_v31  ;;  %v1788_v38 = vor.u32 %v2171_v15, %v1785_v34  ;;  %v1703_v39 = vld [vmem:[#allocation11 + $0x50] sm:$0xf]  ;;  %v2152_v40 = vld [vmem:[#allocation11 + $0x54] sm:$0xf0]  ;;  %v2151_v41 = vld [vmem:[#allocation11 + $0x54] sm:$0xf] }
  0x49   :  { %v1705_v42 = vld [vmem:[#allocation11 + $0x58] sm:$0xf0]  ;;  %v1775_v44 = vld [vmem:[#allocation11 + $0xe0] sm:$0xf]  ;;  %v2170_v45 = vld [vmem:[#allocation11 + $0xe4] sm:$0xf0]  ;;  %v1704_v56 = vor.u32 %v2152_v40, %v1703_v39 }
  0x4a   :  { %556 = vmatpush.bf16.msra.mxu2 %v1540_v1  ;;  %v272_v46 = vperm.slane %v268_v6, 0  ;;  %v2733_v47 = vperm.slane %v309_v14, 3  ;;  %v1776_v50 = vor.u32 %v2170_v45, %v1775_v44  ;;  %v2169_v51 = vld [vmem:[#allocation11 + $0xe4] sm:$0xf]  ;;  %v1777_v52 = vld [vmem:[#allocation11 + $0xe8] sm:$0xf0]  ;;  %v1708_v62 = vor.u32 %v2151_v41, %v1705_v42 }
  0x4b   :  { %569 = vmatpush.bf16.msra.mxu3 %v1604_v2  ;;  %v2735_v55 = vperm.slane %v310_v16, 3  ;;  %v1780_v57 = vor.u32 %v2169_v51, %v1777_v52  ;;  %v1695_v59 = vld [vmem:[#allocation11 + $0x40] sm:$0xf]  ;;  %v2150_v60 = vld [vmem:[#allocation11 + $0x44] sm:$0xf0]  ;;  %v242_v19 = vperm.slane %v2680_v48, 3 }
  0x4c   :  { %779 = vmatpush.bf16.msrb.mxu0 %v1720_v21  ;;  %792 = vmatpush.bf16.msrb.mxu1 %v1784_v37  ;;  %v1767_v1 = vld [vmem:[#allocation11 + $0xd0] sm:$0xf]  ;;  %v2168_v2 = vld [vmem:[#allocation11 + $0xd4] sm:$0xf0]  ;;  %v2167_v6 = vld [vmem:[#allocation11 + $0xd4] sm:$0xf]  ;;  %v1696_v29 = vor.u32 %v2150_v60, %v1695_v59 }
  0x4d   :  { %v2149_v14 = vld [vmem:[#allocation11 + $0x44] sm:$0xf]  ;;  %v1697_v17 = vld [vmem:[#allocation11 + $0x48] sm:$0xf0]  ;;  %v1769_v18 = vld [vmem:[#allocation11 + $0xd8] sm:$0xf0]  ;;  %v1768_v16 = vor.u32 %v2168_v2, %v1767_v1 }
  0x4e   :  { %805 = vmatpush.bf16.msrb.mxu2 %v1724_v28  ;;  %v1772_v21 = vor.u32 %v2167_v6, %v1769_v18  ;;  %v1759_v22 = vld [vmem:[#allocation11 + $0xc0] sm:$0xf]  ;;  %v2166_v30 = vld [vmem:[#allocation11 + $0xc4] sm:$0xf0]  ;;  %v2165_v31 = vld [vmem:[#allocation11 + $0xc4] sm:$0xf] }
  0x4f   :  { %818 = vmatpush.bf16.msrb.mxu3 %v1788_v38  ;;  %v2147_v39 = vld [vmem:[#allocation11 + $0x34] sm:$0xf]  ;;  %v1689_v40 = vld [vmem:[#allocation11 + $0x38] sm:$0xf0]  ;;  %v1760_v41 = vor.u32 %v2166_v30, %v1759_v22  ;;  %v233_v43 = vperm.slane %v229_v10, 2 }
  0x50   :  { %780 = vmatpush.bf16.msrb.mxu0 %v1712_v32  ;;  %793 = vmatpush.bf16.msrb.mxu1 %v1776_v50  ;;  %v1761_v32 = vld [vmem:[#allocation11 + $0xc8] sm:$0xf0]  ;;  %v1679_v18 = vld [vmem:[#allocation11 + $0x20] sm:$0xf]  ;;  %v1671_v30 = vld [vmem:[#allocation11 + $0x10] sm:$0xf] }
  0x52   :  { %806 = vmatpush.bf16.msrb.mxu2 %v1716_v36  ;;  %v1687_v36 = vld [vmem:[#allocation11 + $0x30] sm:$0xf] }
  0x53   :  { %819 = vmatpush.bf16.msrb.mxu3 %v1780_v57 }
  0x54   :  { %781 = vmatpush.bf16.msrb.mxu0 %v1704_v56  ;;  %794 = vmatpush.bf16.msrb.mxu1 %v1768_v16 }
  0x56   :  { %807 = vmatpush.bf16.msrb.mxu2 %v1708_v62 }
  0x57   :  { %820 = vmatpush.bf16.msrb.mxu3 %v1772_v21  ;;  %v1681_v21 = vld [vmem:[#allocation11 + $0x28] sm:$0xf0] }
  0x58   :  { %782 = vmatpush.bf16.msrb.mxu0 %v1696_v29  ;;  %795 = vmatpush.bf16.msrb.mxu1 %v1760_v41 }
  0x86   :  { %v2705_v53 = vpop.permute.xlu2 %225 }
  0x87   :  { %v235_v51 = vmul.f32 %v233_v43, %v2705_v53  ;;  %v2141_v43 = vld [vmem:[#allocation11 + $0x4] sm:$0xf] }
  0x90   :  { %v2731_v35 = vpop.permute.xlu2 %292 }
  0x99   :  { %v307_v42 = vpop.permute.xlu2 %306 }
  0x9a   :  { %v315_v49 = vmul.f32 %v2733_v47, %v307_v42 }
  0x9d   :  { %v2729_v26 = vpop.permute.xlu1 %211 }
  0x9e   :  { %v197_v27 = vpop.permute.xlu0 %196  ;;  %v220_v23 = vmul.f32 %v2690_v25, %v2729_v26  ;;  %v2148_v25 = vld [vmem:[#allocation11 + $0x34] sm:$0xf0] }
  0x9f   :  { %v206_v54 = vmul.f32 %v204_v63, %v197_v27  ;;  %v207_v61 = vmul.f32 %v2710_v0, %v197_v27  ;;  %v243_v63 = vperm.slane %v2680_v48, 7  ;;  %v234_v0 = vmul.f32 %v2687_v20, %v2705_v53 }
  0xa0   :  { %v1700_v20 = vor.u32 %v2149_v14, %v1697_v17  ;;  %v1688_v48 = vor.u32 %v2148_v25, %v1687_v36  ;;  %v2162_v36 = vld [vmem:[#allocation11 + $0xa4] sm:$0xf0]  ;;  %v2161_v25 = vld [vmem:[#allocation11 + $0xa4] sm:$0xf] }
  0xa1   :  { %v208_v24 = vadd.f32 %v206_v54, %v190_v3  ;;  %v209_v33 = vadd.f32 %v207_v61, %v191_v4  ;;  %v221_v3 = vmul.f32 %v2707_v58, %v2729_v26  ;;  %v1764_v58 = vor.u32 %v2165_v31, %v1761_v32  ;;  %v2144_v31 = vld [vmem:[#allocation11 + $0x14] sm:$0xf0]  ;;  %v2143_v32 = vld [vmem:[#allocation11 + $0x14] sm:$0xf] }
  0xa2   :  { %808 = vmatpush.bf16.msrb.mxu2 %v1700_v20  ;;  %v247_v50 = vperm.slane %v243_v63, 3  ;;  %783 = vmatpush.bf16.msrb.mxu0 %v1688_v48  ;;  %v2145_v63 = vld [vmem:[#allocation11 + $0x24] sm:$0xf]  ;;  %v1743_v20 = vld [vmem:[#allocation11 + $0xa0] sm:$0xf] }
  0xa3   :  { %v222_v26 = vadd.f32 %v220_v23, %v208_v24  ;;  %v223_v10 = vadd.f32 %v221_v3, %v209_v33  ;;  %821 = vmatpush.bf16.msrb.mxu3 %v1764_v58  ;;  %v1684_v22 = vor.u32 %v2145_v63, %v1681_v21  ;;  %v2164_v23 = vld [vmem:[#allocation11 + $0xb4] sm:$0xf0]  ;;  %v2163_v24 = vld [vmem:[#allocation11 + $0xb4] sm:$0xf]  ;;  %v1672_v33 = vor.u32 %v2144_v31, %v1671_v30  ;;  %v1903_v63 = vld [vmem:[#allocation13 + $0xe0] sm:$0xf] }
  0xa4   :  { %v1744_v3 = vor.u32 %v2162_v36, %v1743_v20  ;;  %v2160_v58 = vld [vmem:[#allocation11 + $0x94] sm:$0xf0]  ;;  %v1895_v31 = vld [vmem:[#allocation13 + $0xd0] sm:$0xf]  ;;  %v1897_v20 = vld [vmem:[#allocation13 + $0xd8] sm:$0xf0] }
  0xa5   :  { %v237_v54 = vadd.f32 %v235_v51, %v223_v10  ;;  %v1727_v10 = vld [vmem:[#allocation11 + $0x80] sm:$0xf]  ;;  %v2187_v51 = vld [vmem:[#allocation13 + $0x74] sm:$0xf] }
  0xa6   :  { %v279_v27 = vpop.permute.xlu1 %278 }
  0xa7   :  { %v264_v28 = vpop.permute.xlu0 %263  ;;  %v287_v37 = vmul.f32 %v2719_v8, %v279_v27  ;;  %v288_v38 = vmul.f32 %v2721_v9, %v279_v27  ;;  %v301_v8 = vmul.f32 %v2714_v5, %v2731_v35  ;;  %v302_v9 = vmul.f32 %v2717_v7, %v2731_v35 }
  0xa8   :  { %v273_v15 = vmul.f32 %v2725_v13, %v264_v28  ;;  %v274_v34 = vmul.f32 %v272_v46, %v264_v28  ;;  %v246_v46 = vperm.slane %v242_v19, 3  ;;  %v236_v35 = vadd.f32 %v234_v0, %v222_v26  ;;  %v2146_v19 = vld [vmem:[#allocation11 + $0x24] sm:$0xf0]  ;;  %v1751_v0 = vld [vmem:[#allocation11 + $0xb0] sm:$0xf] }
  0xa9   :  { %v1680_v16 = vor.u32 %v2146_v19, %v1679_v18  ;;  %v1752_v27 = vor.u32 %v2164_v23, %v1751_v0  ;;  %v1753_v28 = vld [vmem:[#allocation11 + $0xb8] sm:$0xf0]  ;;  %v2159_v26 = vld [vmem:[#allocation11 + $0x94] sm:$0xf]  ;;  %v1905_v0 = vld [vmem:[#allocation13 + $0xe8] sm:$0xf0] }
  0xaa   :  { %v275_v4 = vadd.f32 %v273_v15, %v258_v11  ;;  %v276_v13 = vadd.f32 %v274_v34, %v259_v12  ;;  %v1692_v11 = vor.u32 %v2147_v39, %v1689_v40  ;;  %v316_v12 = vmul.f32 %v2735_v55, %v307_v42  ;;  %v1673_v15 = vld [vmem:[#allocation11 + $0x18] sm:$0xf0]  ;;  %v1663_v39 = vld [vmem:[#allocation11] sm:$0xf]  ;;  %v2142_v40 = vld [vmem:[#allocation11 + $0x4] sm:$0xf0] }
  0xab   :  { %784 = vmatpush.bf16.msrb.mxu0 %v1680_v16  ;;  %v1756_v29 = vor.u32 %v2163_v24, %v1753_v28  ;;  %796 = vmatpush.bf16.msrb.mxu1 %v1752_v27  ;;  %v1676_v34 = vor.u32 %v2143_v32, %v1673_v15  ;;  %v1664_v41 = vor.u32 %v2142_v40, %v1663_v39  ;;  %v1735_v42 = vld [vmem:[#allocation11 + $0x90] sm:$0xf]  ;;  %v2183_v18 = vld [vmem:[#allocation13 + $0x54] sm:$0xf]  ;;  %v1833_v19 = vld [vmem:[#allocation13 + $0x58] sm:$0xf0] }
  0xac   :  { %v289_v44 = vadd.f32 %v287_v37, %v275_v4  ;;  %v290_v45 = vadd.f32 %v288_v38, %v276_v13  ;;  %809 = vmatpush.bf16.msrb.mxu2 %v1692_v11  ;;  %v1745_v37 = vld [vmem:[#allocation11 + $0xa8] sm:$0xf0]  ;;  %v2202_v16 = vld [vmem:[#allocation13 + $0xe4] sm:$0xf0]  ;;  %v1823_v28 = vld [vmem:[#allocation13 + $0x40] sm:$0xf]  ;;  %v1836_v30 = vor.u32 %v2183_v18, %v1833_v19 }
  0xad   :  { %822 = vmatpush.bf16.msrb.mxu3 %v1756_v29  ;;  %v1748_v38 = vor.u32 %v2161_v25, %v1745_v37  ;;  %v1665_v4 = vld [vmem:[#allocation11 + $0x8] sm:$0xf0]  ;;  %v1904_v21 = vor.u32 %v2202_v16, %v1903_v63  ;;  %v2182_v29 = vld [vmem:[#allocation13 + $0x44] sm:$0xf0]  ;;  %v2200_v32 = vld [vmem:[#allocation13 + $0xd4] sm:$0xf0] }
  0xae   :  { %v303_v52 = vadd.f32 %v301_v8, %v289_v44  ;;  %v304_v5 = vadd.f32 %v302_v9, %v290_v45  ;;  %v1668_v13 = vor.u32 %v2141_v43, %v1665_v4  ;;  %v1736_v8 = vor.u32 %v2160_v58, %v1735_v42  ;;  %v1737_v9 = vld [vmem:[#allocation11 + $0x98] sm:$0xf0]  ;;  %v2158_v44 = vld [vmem:[#allocation11 + $0x84] sm:$0xf0]  ;;  %v2157_v45 = vld [vmem:[#allocation11 + $0x84] sm:$0xf] }
  0xaf   :  { %v240_v7 = vpop.permute.xlu1 %239  ;;  %785 = vmatpush.bf16.msrb.mxu0 %v1672_v33  ;;  %797 = vmatpush.bf16.msrb.mxu1 %v1744_v3  ;;  %v1740_v48 = vor.u32 %v2159_v26, %v1737_v9  ;;  %v1728_v11 = vor.u32 %v2158_v44, %v1727_v10  ;;  %v357_v23 = vld [vmem:[%s2820_s6] sm:$0x3]  ;;  %v2199_v33 = vld [vmem:[#allocation13 + $0xd4] sm:$0xf]  ;;  %v2181_v15 = vld [vmem:[#allocation13 + $0x44] sm:$0xf]  ;;  %v1896_v36 = vor.u32 %v2200_v32, %v1895_v31 }
  0xb0   :  { %v317_v56 = vadd.f32 %v315_v49, %v303_v52  ;;  %v318_v57 = vadd.f32 %v316_v12, %v304_v5  ;;  %v248_v59 = vmul.f32 %v246_v46, %v240_v7  ;;  %v249_v60 = vmul.f32 %v247_v50, %v240_v7  ;;  %810 = vmatpush.bf16.msrb.mxu2 %v1684_v22  ;;  %v1729_v49 = vld [vmem:[#allocation11 + $0x88] sm:$0xf0]  ;;  %v1847_v46 = vld [vmem:[#allocation13 + $0x70] sm:$0xf]  ;;  %v2188_v50 = vld [vmem:[#allocation13 + $0x74] sm:$0xf0] }
  0xb1   :  { %823 = vmatpush.bf16.msrb.mxu3 %v1748_v38  ;;  %v1732_v12 = vor.u32 %v2157_v45, %v1729_v49  ;;  %v1848_v52 = vor.u32 %v2188_v50, %v1847_v46  ;;  %v1849_v5 = vld [vmem:[#allocation13 + $0x78] sm:$0xf0]  ;;  %v1839_v7 = vld [vmem:[#allocation13 + $0x60] sm:$0xf]  ;;  %v2201_v22 = vld [vmem:[#allocation13 + $0xe4] sm:$0xf]  ;;  %v1900_v25 = vor.u32 %v2199_v33, %v1897_v20  ;;  %v1824_v37 = vor.u32 %v2182_v29, %v1823_v28 }
  0xb2   :  { %v250_v47 = vadd.f32 %v248_v59, %v236_v35  ;;  %v251_v61 = vadd.f32 %v249_v60, %v237_v54  ;;  %v319_v55 = vmax.f32 %v317_v56, 0.0  ;;  %v320_v62 = vmax.f32 %v318_v57, 0.0  ;;  %v2186_v35 = vld [vmem:[#allocation13 + $0x64] sm:$0xf0]  ;;  %v2185_v56 = vld [vmem:[#allocation13 + $0x64] sm:$0xf] }
  0xb3   :  { %786 = vmatpush.bf16.msrb.mxu0 %v1664_v41  ;;  %798 = vmatpush.bf16.msrb.mxu1 %v1736_v8  ;;  %v1852_v54 = vor.u32 %v2187_v51, %v1849_v5  ;;  %v1841_v57 = vld [vmem:[#allocation13 + $0x68] sm:$0xf0]  ;;  %v1911_v59 = vld [vmem:[#allocation13 + $0xf0] sm:$0xf]  ;;  %v1840_v60 = vor.u32 %v2186_v35, %v1839_v7  ;;  %v1908_v27 = vor.u32 %v2201_v22, %v1905_v0  ;;  %v359_v3 = vperm.slane %v357_v23, 0 }
  0xb4   :  { %v252_v1 = vmax.f32 %v250_v47, 0.0  ;;  %v253_v2 = vmax.f32 %v251_v61, 0.0  ;;  %811 = vmatpush.bf16.msrb.mxu2 %v1676_v34  ;;  %v2204_v47 = vld [vmem:[#allocation13 + $0xf4] sm:$0xf0]  ;;  %v2203_v61 = vld [vmem:[#allocation13 + $0xf4] sm:$0xf] }
  0xb5   :  { %824 = vmatpush.bf16.msrb.mxu3 %v1740_v48  ;;  %v1825_v34 = vld [vmem:[#allocation13 + $0x48] sm:$0xf0]  ;;  %v360_v4 = vperm.slane %v357_v23, 1  ;;  %v1815_v46 = vld [vmem:[#allocation13 + $0x30] sm:$0xf] }
  0xb6   :  { %v2766_v53 = vadd.f32 %v319_v55, %v252_v1  ;;  %v2768_v6 = vadd.f32 %v320_v62, %v253_v2  ;;  %v1913_v55 = vld [vmem:[#allocation13 + $0xf8] sm:$0xf0]  ;;  %v1844_v62 = vor.u32 %v2185_v56, %v1841_v57  ;;  %v1912_v1 = vor.u32 %v2204_v47, %v1911_v59  ;;  %v2180_v50 = vld [vmem:[#allocation13 + $0x34] sm:$0xf0]  ;;  %v2179_v51 = vld [vmem:[#allocation13 + $0x34] sm:$0xf] }
  0xb7   :  { %799 = vmatpush.bf16.msrb.mxu1 %v1728_v11  ;;  %v1916_v2 = vor.u32 %v2203_v61, %v1913_v55  ;;  %v1828_v38 = vor.u32 %v2181_v15, %v1825_v34  ;;  %v1817_v5 = vld [vmem:[#allocation13 + $0x38] sm:$0xf0]  ;;  %v1887_v35 = vld [vmem:[#allocation13 + $0xc0] sm:$0xf]  ;;  %v2197_v56 = vld [vmem:[#allocation13 + $0xc4] sm:$0xf] }
  0xb8   :  { %v323_v14 = vpack.c.bf16 %v2766_v53, %v2766_v53  ;;  %v324_v17 = vpack.c.bf16 %v2768_v6, %v2768_v6  ;;  %812 = vmatpush.bf16.msrb.mxu2 %v1668_v13  ;;  %v1820_v7 = vor.u32 %v2179_v51, %v1817_v5  ;;  %v1807_v59 = vld [vmem:[#allocation13 + $0x20] sm:$0xf]  ;;  %v2177_v55 = vld [vmem:[#allocation13 + $0x24] sm:$0xf]  ;;  %v1881_v19 = vld [vmem:[#allocation13 + $0xb8] sm:$0xf0] }
  0xb9   :  { %825 = vmatpush.bf16.msrb.mxu3 %v1732_v12  ;;  %v1799_v16 = vld [vmem:[#allocation13 + $0x10] sm:$0xf]  ;;  %v2175_v0 = vld [vmem:[#allocation13 + $0x14] sm:$0xf]  ;;  %v1801_v23 = vld [vmem:[#allocation13 + $0x18] sm:$0xf0] }
  0xba   :  { %531 = vmatmul.bf16.vlgmr.msra.gmra.mxu0 %v323_v14  ;;  %544 = vmatmul.bf16.vlgmr.msra.gmra.mxu1 %v324_v17  ;;  %v2194_v28 = vld [vmem:[#allocation13 + $0xa4] sm:$0xf0]  ;;  %v2193_v29 = vld [vmem:[#allocation13 + $0xa4] sm:$0xf]  ;;  %v1873_v31 = vld [vmem:[#allocation13 + $0xa8] sm:$0xf0] }
  0xbb   :  { %557 = vmatmul.bf16.vlgmr.msra.gmra.mxu2 %v323_v14  ;;  %570 = vmatmul.bf16.vlgmr.msra.gmra.mxu3 %v324_v17  ;;  %v1831_v14 = vld [vmem:[#allocation13 + $0x50] sm:$0xf]  ;;  %v2184_v17 = vld [vmem:[#allocation13 + $0x54] sm:$0xf0]  ;;  %v1876_v32 = vor.u32 %v2193_v29, %v1873_v31  ;;  %v1791_v33 = vld [vmem:[#allocation13] sm:$0xf] }
  0xbc   :  { %1035 = vmatpush.bf16.msra.mxu0 %v1848_v52  ;;  %1061 = vmatpush.bf16.msra.mxu2 %v1852_v54  ;;  %v1832_v24 = vor.u32 %v2184_v17, %v1831_v14  ;;  %v1816_v52 = vor.u32 %v2180_v50, %v1815_v46  ;;  %v2198_v54 = vld [vmem:[#allocation13 + $0xc4] sm:$0xf0]  ;;  %v2196_v14 = vld [vmem:[#allocation13 + $0xb4] sm:$0xf0]  ;;  %v2195_v17 = vld [vmem:[#allocation13 + $0xb4] sm:$0xf] }
  0xbd   :  { %1048 = vmatpush.bf16.msra.mxu1 %v1912_v1  ;;  %1074 = vmatpush.bf16.msra.mxu3 %v1916_v2  ;;  %v1888_v57 = vor.u32 %v2198_v54, %v1887_v35  ;;  %v1879_v2 = vld [vmem:[#allocation13 + $0xb0] sm:$0xf]  ;;  %v1884_v63 = vor.u32 %v2195_v17, %v1881_v19  ;;  %v2174_v15 = vld [vmem:[#allocation13 + $0x4] sm:$0xf0]  ;;  %v2173_v34 = vld [vmem:[#allocation13 + $0x4] sm:$0xf] }
  0xbe   :  { %v1880_v18 = vor.u32 %v2196_v14, %v1879_v2  ;;  %v1792_v20 = vor.u32 %v2174_v15, %v1791_v33  ;;  %v2217_v46 = vld [vmem:[#allocation14 + $0x64] sm:$0xf]  ;;  %v1969_v50 = vld [vmem:[#allocation14 + $0x68] sm:$0xf0]  ;;  %v2039_v51 = vld [vmem:[#allocation14 + $0xf0] sm:$0xf] }
  0xbf   :  { %v2236_v5 = vld [vmem:[#allocation14 + $0xf4] sm:$0xf0]  ;;  %v2041_v35 = vld [vmem:[#allocation14 + $0xf8] sm:$0xf0]  ;;  %v1972_v54 = vor.u32 %v2217_v46, %v1969_v50  ;;  %v2033_v2 = vld [vmem:[#allocation14 + $0xe8] sm:$0xf0] }
  0xc0   :  { %1036 = vmatpush.bf16.msra.mxu0 %v1840_v60  ;;  %1062 = vmatpush.bf16.msra.mxu2 %v1844_v62  ;;  %v2178_v60 = vld [vmem:[#allocation13 + $0x24] sm:$0xf0]  ;;  %v1809_v62 = vld [vmem:[#allocation13 + $0x28] sm:$0xf0]  ;;  %v1951_v19 = vld [vmem:[#allocation14 + $0x40] sm:$0xf] }
  0xc1   :  { %1049 = vmatpush.bf16.msra.mxu1 %v1904_v21  ;;  %1075 = vmatpush.bf16.msra.mxu3 %v1908_v27  ;;  %v1808_v61 = vor.u32 %v2178_v60, %v1807_v59  ;;  %v1812_v1 = vor.u32 %v2177_v55, %v1809_v62  ;;  %v2176_v21 = vld [vmem:[#allocation13 + $0x14] sm:$0xf0]  ;;  %v1871_v27 = vld [vmem:[#allocation13 + $0xa0] sm:$0xf]  ;;  %v2215_v60 = vld [vmem:[#allocation14 + $0x54] sm:$0xf] }
  0xc2   :  { %v1800_v22 = vor.u32 %v2176_v21, %v1799_v16  ;;  %v2216_v59 = vld [vmem:[#allocation14 + $0x54] sm:$0xf0]  ;;  %v2234_v55 = vld [vmem:[#allocation14 + $0xe4] sm:$0xf0]  ;;  %v613_v14 = vld [vmem:[%s2822_s8] sm:$0x3] }
  0xc3   :  { %v2023_v21 = vld [vmem:[#allocation14 + $0xd0] sm:$0xf]  ;;  %v2229_v46 = vld [vmem:[#allocation14 + $0xc4] sm:$0xf] }
  0xc4   :  { %1037 = vmatpush.bf16.msra.mxu0 %v1832_v24  ;;  %1063 = vmatpush.bf16.msra.mxu2 %v1836_v30  ;;  %v1804_v24 = vor.u32 %v2175_v0, %v1801_v23  ;;  %v1872_v30 = vor.u32 %v2194_v28, %v1871_v27  ;;  %v2231_v0 = vld [vmem:[#allocation14 + $0xd4] sm:$0xf]  ;;  %v2213_v23 = vld [vmem:[#allocation14 + $0x44] sm:$0xf]  ;;  %v2025_v27 = vld [vmem:[#allocation14 + $0xd8] sm:$0xf0] }
  0xc5   :  { %1050 = vmatpush.bf16.msra.mxu1 %v1896_v36  ;;  %1076 = vmatpush.bf16.msra.mxu3 %v1900_v25  ;;  %v1793_v36 = vld [vmem:[#allocation13 + $0x8] sm:$0xf0] }
  0xc6   :  { %v1796_v25 = vor.u32 %v2173_v34, %v1793_v36 }
  0xc8   :  { %1038 = vmatpush.bf16.msra.mxu0 %v1824_v37  ;;  %1064 = vmatpush.bf16.msra.mxu2 %v1828_v38  ;;  %v2192_v37 = vld [vmem:[#allocation13 + $0x94] sm:$0xf0]  ;;  %v2191_v38 = vld [vmem:[#allocation13 + $0x94] sm:$0xf] }
  0xc9   :  { %1051 = vmatpush.bf16.msra.mxu1 %v1888_v57 }
  0xcc   :  { %1039 = vmatpush.bf16.msra.mxu0 %v1816_v52  ;;  %1065 = vmatpush.bf16.msra.mxu2 %v1820_v7  ;;  %v2235_v7 = vld [vmem:[#allocation14 + $0xf4] sm:$0xf] }
  0xcd   :  { %1052 = vmatpush.bf16.msra.mxu1 %v1880_v18  ;;  %v2044_v57 = vor.u32 %v2235_v7, %v2041_v35  ;;  %v2209_v7 = vld [vmem:[#allocation14 + $0x24] sm:$0xf] }
  0xd0   :  { %1040 = vmatpush.bf16.msra.mxu0 %v1808_v61  ;;  %1066 = vmatpush.bf16.msra.mxu2 %v1812_v1  ;;  %v2031_v61 = vld [vmem:[#allocation14 + $0xe0] sm:$0xf]  ;;  %v2233_v1 = vld [vmem:[#allocation14 + $0xe4] sm:$0xf] }
  0xd1   :  { %1053 = vmatpush.bf16.msra.mxu1 %v1872_v30  ;;  %v2032_v62 = vor.u32 %v2234_v55, %v2031_v61  ;;  %v2036_v18 = vor.u32 %v2233_v1, %v2033_v2  ;;  %v2028_v30 = vor.u32 %v2231_v0, %v2025_v27  ;;  %v1927_v55 = vld [vmem:[#allocation14 + $0x10] sm:$0xf]  ;;  %v2207_v2 = vld [vmem:[#allocation14 + $0x14] sm:$0xf]  ;;  %v1919_v0 = vld [vmem:[#allocation14] sm:$0xf] }
  0xd4   :  { %1041 = vmatpush.bf16.msra.mxu0 %v1800_v22  ;;  %1067 = vmatpush.bf16.msra.mxu2 %v1804_v24  ;;  %v2232_v22 = vld [vmem:[#allocation14 + $0xd4] sm:$0xf0]  ;;  %v1953_v24 = vld [vmem:[#allocation14 + $0x48] sm:$0xf0] }
  0xd5   :  { %v2024_v29 = vor.u32 %v2232_v22, %v2023_v21  ;;  %v1956_v33 = vor.u32 %v2213_v23, %v1953_v24  ;;  %v2001_v21 = vld [vmem:[#allocation14 + $0xa8] sm:$0xf0]  ;;  %v2206_v23 = vld [vmem:[#allocation14 + $0x4] sm:$0xf0]  ;;  %v2205_v24 = vld [vmem:[#allocation14 + $0x4] sm:$0xf] }
  0xd6   :  { %v1920_v27 = vor.u32 %v2206_v23, %v1919_v0 }
  0xd8   :  { %1042 = vmatpush.bf16.msra.mxu0 %v1792_v20  ;;  %1068 = vmatpush.bf16.msra.mxu2 %v1796_v25  ;;  %v616_v25 = vperm.slane %v613_v14, 1 }
 0x137   :  { %v532_v39 = vpop.f32.mrf.mxu0  ;;  %v545_v40 = vpop.f32.mrf.mxu1 }
 0x138   :  { %v533_v41 = vadd.f32 %v532_v39, %v359_v3  ;;  %v1863_v3 = vld [vmem:[#allocation13 + $0x90] sm:$0xf] }
 0x139   :  { %v1864_v39 = vor.u32 %v2192_v37, %v1863_v3 }
 0x13a   :  { %v546_v43 = vadd.f32 %v545_v40, %v533_v41  ;;  %v1865_v40 = vld [vmem:[#allocation13 + $0x98] sm:$0xf0] }
 0x13b   :  { %v1868_v41 = vor.u32 %v2191_v38, %v1865_v40  ;;  %1054 = vmatpush.bf16.msra.mxu1 %v1864_v39 }
 0x13c   :  { %v575_v13 = vmax.f32 %v546_v43, 0.0  ;;  %v1855_v43 = vld [vmem:[#allocation13 + $0x80] sm:$0xf] }
 0x13e   :  { %v2778_v42 = vadd.f32 %v575_v13, %v2766_v53  ;;  %v558_v58 = vpop.f32.mrf.mxu2  ;;  %v571_v26 = vpop.f32.mrf.mxu3  ;;  %v2189_v13 = vld [vmem:[#allocation13 + $0x84] sm:$0xf] }
 0x13f   :  { %v559_v8 = vadd.f32 %v558_v58, %v360_v4  ;;  %v534_v9 = vpop.f32.mrf.mxu0  ;;  %v547_v48 = vpop.f32.mrf.mxu1  ;;  %v2190_v4 = vld [vmem:[#allocation13 + $0x84] sm:$0xf0] }
 0x140   :  { %v579_v10 = vpack.c.bf16 %v2778_v42, %v2778_v42  ;;  %v1856_v58 = vor.u32 %v2190_v4, %v1855_v43  ;;  %v1975_v9 = vld [vmem:[#allocation14 + $0x70] sm:$0xf]  ;;  %v2220_v48 = vld [vmem:[#allocation14 + $0x74] sm:$0xf0] }
 0x141   :  { %v572_v44 = vadd.f32 %v571_v26, %v559_v8  ;;  %v1857_v26 = vld [vmem:[#allocation13 + $0x88] sm:$0xf0] }
 0x142   :  { %787 = vmatmul.bf16.vlgmr.msrb.gmra.mxu0 %v579_v10  ;;  %813 = vmatmul.bf16.vlgmr.msrb.gmra.mxu2 %v579_v10  ;;  %v1860_v8 = vor.u32 %v2189_v13, %v1857_v26  ;;  %v2219_v10 = vld [vmem:[#allocation14 + $0x74] sm:$0xf] }
 0x143   :  { %v576_v45 = vmax.f32 %v572_v44, 0.0  ;;  %1055 = vmatpush.bf16.msra.mxu1 %v1856_v58  ;;  %v1976_v44 = vor.u32 %v2220_v48, %v1975_v9  ;;  %v2212_v48 = vld [vmem:[#allocation14 + $0x34] sm:$0xf0] }
 0x145   :  { %v2783_v11 = vadd.f32 %v576_v45, %v2768_v6  ;;  %v1889_v6 = vld [vmem:[#allocation13 + $0xc8] sm:$0xf0]  ;;  %v1977_v45 = vld [vmem:[#allocation14 + $0x78] sm:$0xf0]  ;;  %1291 = vmatpush.bf16.msrb.mxu0 %v1976_v44 }
 0x146   :  { %v560_v49 = vpop.f32.mrf.mxu2  ;;  %v573_v12 = vpop.f32.mrf.mxu3  ;;  %v1892_v47 = vor.u32 %v2197_v56, %v1889_v6  ;;  %v2040_v56 = vor.u32 %v2236_v5, %v2039_v51  ;;  %v1959_v6 = vld [vmem:[#allocation14 + $0x50] sm:$0xf]  ;;  %v2017_v51 = vld [vmem:[#allocation14 + $0xc8] sm:$0xf0]  ;;  %v2210_v5 = vld [vmem:[#allocation14 + $0x24] sm:$0xf0] }
 0x147   :  { %v580_v53 = vpack.c.bf16 %v2783_v11, %v2783_v11  ;;  %v1967_v49 = vld [vmem:[#allocation14 + $0x60] sm:$0xf]  ;;  %v2218_v12 = vld [vmem:[#allocation14 + $0x64] sm:$0xf0]  ;;  %v1960_v17 = vor.u32 %v2216_v59, %v1959_v6  ;;  %v2228_v6 = vld [vmem:[#allocation14 + $0xb4] sm:$0xf0] }
 0x148   :  { %1077 = vmatpush.bf16.msra.mxu3 %v1892_v47  ;;  %v1968_v52 = vor.u32 %v2218_v12, %v1967_v49  ;;  %v1961_v47 = vld [vmem:[#allocation14 + $0x58] sm:$0xf0]  ;;  %v2015_v12 = vld [vmem:[#allocation14 + $0xc0] sm:$0xf]  ;;  %v2227_v59 = vld [vmem:[#allocation14 + $0xb4] sm:$0xf] }
 0x149   :  { %800 = vmatmul.bf16.vlgmr.msrb.gmra.mxu1 %v580_v53  ;;  %826 = vmatmul.bf16.vlgmr.msrb.gmra.mxu3 %v580_v53  ;;  %v1980_v53 = vor.u32 %v2219_v10, %v1977_v45  ;;  %v1964_v16 = vor.u32 %v2215_v60, %v1961_v47  ;;  %v2211_v10 = vld [vmem:[#allocation14 + $0x34] sm:$0xf]  ;;  %v1945_v45 = vld [vmem:[#allocation14 + $0x38] sm:$0xf0] }
 0x14a   :  { %1304 = vmatpush.bf16.msrb.mxu1 %v2040_v56  ;;  %1292 = vmatpush.bf16.msrb.mxu0 %v1968_v52  ;;  %v1948_v49 = vor.u32 %v2211_v10, %v1945_v45  ;;  %v1935_v52 = vld [vmem:[#allocation14 + $0x20] sm:$0xf]  ;;  %v2009_v47 = vld [vmem:[#allocation14 + $0xb8] sm:$0xf0] }
 0x14b   :  { %1317 = vmatpush.bf16.msrb.mxu2 %v1980_v53  ;;  %v2230_v53 = vld [vmem:[#allocation14 + $0xc4] sm:$0xf0]  ;;  %v1936_v35 = vor.u32 %v2210_v5, %v1935_v52  ;;  %v2012_v61 = vor.u32 %v2227_v59, %v2009_v47  ;;  %v2240_v59 = vld [vmem:[#allocation16 + $0x18] sm:$0xff]  ;;  %v2239_v47 = vld [vmem:[#allocation16 + $0x10] sm:$0xff] }
 0x14c   :  { %1078 = vmatpush.bf16.msra.mxu3 %v1884_v63  ;;  %v2214_v63 = vld [vmem:[#allocation14 + $0x44] sm:$0xf0]  ;;  %v2016_v50 = vor.u32 %v2230_v53, %v2015_v12 }
 0x14d   :  { %v1952_v31 = vor.u32 %v2214_v63, %v1951_v19  ;;  %v2226_v19 = vld [vmem:[#allocation14 + $0xa4] sm:$0xf0]  ;;  %v2225_v63 = vld [vmem:[#allocation14 + $0xa4] sm:$0xf] }
 0x14e   :  { %1305 = vmatpush.bf16.msrb.mxu1 %v2032_v62  ;;  %1293 = vmatpush.bf16.msrb.mxu0 %v1960_v17  ;;  %v2208_v62 = vld [vmem:[#allocation14 + $0x14] sm:$0xf0]  ;;  %v2004_v22 = vor.u32 %v2225_v63, %v2001_v21 }
 0x14f   :  { %1318 = vmatpush.bf16.msrb.mxu2 %v1972_v54  ;;  %v1937_v54 = vld [vmem:[#allocation14 + $0x28] sm:$0xf0]  ;;  %v1928_v1 = vor.u32 %v2208_v62, %v1927_v55  ;;  %v2247_v55 = vld [vmem:[#allocation16 + $0x50] sm:$0xff]  ;;  %v2237_v62 = vld [vmem:[#allocation16] sm:$0xff] }
 0x150   :  { %1079 = vmatpush.bf16.msra.mxu3 %v1876_v32  ;;  %v615_v32 = vperm.slane %v613_v14, 0  ;;  %v1940_v56 = vor.u32 %v2209_v7, %v1937_v54  ;;  %v1929_v14 = vld [vmem:[#allocation14 + $0x18] sm:$0xf0] }
 0x151   :  { %v1932_v17 = vor.u32 %v2207_v2, %v1929_v14  ;;  %v1125_v2 = vld [vmem:[%s2826_s12] sm:$0x3] }
 0x152   :  { %1306 = vmatpush.bf16.msrb.mxu1 %v2024_v29  ;;  %1294 = vmatpush.bf16.msrb.mxu0 %v1952_v31  ;;  %v2224_v31 = vld [vmem:[#allocation14 + $0x94] sm:$0xf0]  ;;  %v1128_v21 = vperm.slane %v1125_v2, 1 }
 0x153   :  { %1319 = vmatpush.bf16.msrb.mxu2 %v1964_v16 }
 0x154   :  { %1080 = vmatpush.bf16.msra.mxu3 %v1868_v41 }
 0x156   :  { %1307 = vmatpush.bf16.msrb.mxu1 %v2016_v50 }
 0x157   :  { %1320 = vmatpush.bf16.msrb.mxu2 %v1956_v33 }
 0x158   :  { %1081 = vmatpush.bf16.msra.mxu3 %v1860_v8 }
 0x15b   :  { %1321 = vmatpush.bf16.msrb.mxu2 %v1948_v49 }
 0x15c   :  { %1330 = vmatpush.bf16.msrb.mxu3 %v2044_v57  ;;  %v2007_v57 = vld [vmem:[#allocation14 + $0xb0] sm:$0xf] }
 0x15d   :  { %v2008_v60 = vor.u32 %v2228_v6, %v2007_v57 }
 0x15f   :  { %1322 = vmatpush.bf16.msrb.mxu2 %v1940_v56  ;;  %1308 = vmatpush.bf16.msrb.mxu1 %v2008_v60  ;;  %v2249_v60 = vld [vmem:[#allocation16 + $0x60] sm:$0xff] }
 0x160   :  { %1331 = vmatpush.bf16.msrb.mxu3 %v2036_v18  ;;  %v1999_v18 = vld [vmem:[#allocation14 + $0xa0] sm:$0xf] }
 0x161   :  { %v2000_v16 = vor.u32 %v2226_v19, %v1999_v18 }
 0x163   :  { %1323 = vmatpush.bf16.msrb.mxu2 %v1932_v17  ;;  %1309 = vmatpush.bf16.msrb.mxu1 %v2000_v16  ;;  %v1127_v17 = vperm.slane %v1125_v2, 0 }
 0x164   :  { %1332 = vmatpush.bf16.msrb.mxu3 %v2028_v30  ;;  %v1991_v30 = vld [vmem:[#allocation14 + $0x90] sm:$0xf] }
 0x165   :  { %v1992_v33 = vor.u32 %v2224_v31, %v1991_v30 }
 0x167   :  { %1310 = vmatpush.bf16.msrb.mxu1 %v1992_v33 }
 0x1bf   :  { %v788_v28 = vpop.f32.mrf.mxu0 }
 0x1c0   :  { %v789_v15 = vadd.f32 %v788_v28, %v615_v32  ;;  %v1921_v28 = vld [vmem:[#allocation14 + $0x8] sm:$0xf0]  ;;  %v2223_v32 = vld [vmem:[#allocation14 + $0x94] sm:$0xf] }
 0x1c1   :  { %v1924_v29 = vor.u32 %v2205_v24, %v1921_v28 }
 0x1c3   :  { %1324 = vmatpush.bf16.msrb.mxu2 %v1924_v29 }
 0x1c5   :  { %v814_v34 = vpop.f32.mrf.mxu2 }
 0x1c6   :  { %v801_v20 = vpop.f32.mrf.mxu1  ;;  %v815_v39 = vadd.f32 %v814_v34, %v616_v25  ;;  %v2221_v25 = vld [vmem:[#allocation14 + $0x84] sm:$0xf] }
 0x1c7   :  { %v802_v36 = vadd.f32 %v801_v20, %v789_v15  ;;  %v790_v3 = vpop.f32.mrf.mxu0  ;;  %v1993_v15 = vld [vmem:[#allocation14 + $0x98] sm:$0xf0]  ;;  %v1983_v20 = vld [vmem:[#allocation14 + $0x80] sm:$0xf] }
 0x1c8   :  { %v1996_v34 = vor.u32 %v2223_v32, %v1993_v15 }
 0x1c9   :  { %v831_v37 = vmax.f32 %v802_v36, 0.0  ;;  %v2222_v36 = vld [vmem:[#allocation14 + $0x84] sm:$0xf0] }
 0x1ca   :  { %v1984_v3 = vor.u32 %v2222_v36, %v1983_v20  ;;  %v2284_v36 = vld [vmem:[%s2828_s14] ss:$0 sm:$0xff] }
 0x1cb   :  { %v2791_v38 = vadd.f32 %v831_v37, %v2778_v42  ;;  %v1943_v42 = vld [vmem:[#allocation14 + $0x30] sm:$0xf]  ;;  %v1985_v37 = vld [vmem:[#allocation14 + $0x88] sm:$0xf0] }
 0x1cc   :  { %v827_v40 = vpop.f32.mrf.mxu3  ;;  %v1944_v44 = vor.u32 %v2212_v48, %v1943_v42  ;;  %1311 = vmatpush.bf16.msrb.mxu1 %v1984_v3 }
 0x1cd   :  { %v835_v41 = vpack.c.bf16 %v2791_v38, %v2791_v38  ;;  %v828_v43 = vadd.f32 %v827_v40, %v815_v39  ;;  %v816_v4 = vpop.f32.mrf.mxu2  ;;  %v1988_v39 = vor.u32 %v2221_v25, %v1985_v37  ;;  %v2244_v40 = vld [vmem:[#allocation16 + $0x38] sm:$0xff] }
 0x1ce   :  { %v803_v13 = vpop.f32.mrf.mxu1  ;;  %1295 = vmatpush.bf16.msrb.mxu0 %v1944_v44  ;;  %v2251_v4 = vld [vmem:[#allocation16 + $0x70] sm:$0xff] }
 0x1cf   :  { %v832_v58 = vmax.f32 %v828_v43, 0.0  ;;  %1043 = vmatmul.bf16.vlgmr.msra.gmra.mxu0 %v835_v41  ;;  %1069 = vmatmul.bf16.vlgmr.msra.gmra.mxu2 %v835_v41  ;;  %v2252_v41 = vld [vmem:[#allocation16 + $0x78] sm:$0xff]  ;;  %v2243_v43 = vld [vmem:[#allocation16 + $0x30] sm:$0xff]  ;;  %v2242_v13 = vld [vmem:[#allocation16 + $0x28] sm:$0xff] }
 0x1d1   :  { %v2796_v26 = vadd.f32 %v832_v58, %v2783_v11  ;;  %v2020_v11 = vor.u32 %v2229_v46, %v2017_v51  ;;  %v2250_v58 = vld [vmem:[#allocation16 + $0x68] sm:$0xff] }
 0x1d2   :  { %1296 = vmatpush.bf16.msrb.mxu0 %v1936_v35 }
 0x1d3   :  { %v836_v8 = vpack.c.bf16 %v2796_v26, %v2796_v26  ;;  %1333 = vmatpush.bf16.msrb.mxu3 %v2020_v11 }
 0x1d4   :  { %v829_v9 = vpop.f32.mrf.mxu3 }
 0x1d5   :  { %1056 = vmatmul.bf16.vlgmr.msra.gmra.mxu1 %v836_v8  ;;  %1082 = vmatmul.bf16.vlgmr.msra.gmra.mxu3 %v836_v8  ;;  %v869_v8 = vld [vmem:[%s2824_s10] sm:$0x3]  ;;  %v2241_v9 = vld [vmem:[#allocation16 + $0x20] sm:$0xff] }
 0x1d6   :  { %1297 = vmatpush.bf16.msrb.mxu0 %v1928_v1  ;;  %1494 = vmatpush.bf16.msra.mxu1 %v2252_v41  ;;  %v871_v48 = vperm.slane %v869_v8, 0  ;;  %v872_v12 = vperm.slane %v869_v8, 1  ;;  %v2246_v1 = vld [vmem:[#allocation16 + $0x48] sm:$0xff] }
 0x1d7   :  { %1334 = vmatpush.bf16.msrb.mxu3 %v2012_v61  ;;  %v2238_v61 = vld [vmem:[#allocation16 + $0x8] sm:$0xff] }
 0x1da   :  { %1298 = vmatpush.bf16.msrb.mxu0 %v1920_v27  ;;  %1495 = vmatpush.bf16.msra.mxu1 %v2251_v4 }
 0x1db   :  { %1335 = vmatpush.bf16.msrb.mxu3 %v2004_v22 }
 0x1de   :  { %1481 = vmatpush.bf16.msra.mxu0 %v2244_v40  ;;  %1496 = vmatpush.bf16.msra.mxu1 %v2250_v58 }
 0x1df   :  { %1336 = vmatpush.bf16.msrb.mxu3 %v1996_v34 }
 0x1e2   :  { %1482 = vmatpush.bf16.msra.mxu0 %v2243_v43  ;;  %1497 = vmatpush.bf16.msra.mxu1 %v2249_v60 }
 0x1e3   :  { %1337 = vmatpush.bf16.msrb.mxu3 %v1988_v39 }
 0x1e6   :  { %1483 = vmatpush.bf16.msra.mxu0 %v2242_v13 }
 0x1ea   :  { %1484 = vmatpush.bf16.msra.mxu0 %v2241_v9 }
 0x1ee   :  { %1485 = vmatpush.bf16.msra.mxu0 %v2240_v59 }
 0x1f2   :  { %1486 = vmatpush.bf16.msra.mxu0 %v2239_v47 }
 0x1f6   :  { %1487 = vmatpush.bf16.msra.mxu0 %v2238_v61 }
 0x1fa   :  { %1488 = vmatpush.bf16.msra.mxu0 %v2237_v62 }
 0x24c   :  { %v1044_v42 = vpop.f32.mrf.mxu0 }
 0x24d   :  { %v1045_v10 = vadd.f32 %v1044_v42, %v871_v48 }
 0x252   :  { %v1057_v44 = vpop.f32.mrf.mxu1  ;;  %v1070_v45 = vpop.f32.mrf.mxu2 }
 0x253   :  { %v1058_v49 = vadd.f32 %v1057_v44, %v1045_v10  ;;  %v1071_v51 = vadd.f32 %v1070_v45, %v872_v12 }
 0x254   :  { %v1046_v53 = vpop.f32.mrf.mxu0 }
 0x255   :  { %v1087_v46 = vmax.f32 %v1058_v49, 0.0 }
 0x257   :  { %v1089_v50 = vadd.f32 %v1087_v46, %v2791_v38  ;;  %v2248_v38 = vld [vmem:[#allocation16 + $0x58] sm:$0xff] }
 0x258   :  { %v1083_v11 = vpop.f32.mrf.mxu3  ;;  %1498 = vmatpush.bf16.msra.mxu1 %v2248_v38 }
 0x259   :  { %v1091_v52 = vpack.c.bf16 %v1089_v50, %v1089_v50  ;;  %v1084_v5 = vadd.f32 %v1083_v11, %v1071_v51 }
 0x25a   :  { %v1059_v7 = vpop.f32.mrf.mxu1  ;;  %v1072_v35 = vpop.f32.mrf.mxu2 }
 0x25b   :  { %v1088_v54 = vmax.f32 %v1084_v5, 0.0  ;;  %1299 = vmatmul.bf16.vlgmr.msrb.gmra.mxu0 %v1091_v52  ;;  %1325 = vmatmul.bf16.vlgmr.msrb.gmra.mxu2 %v1091_v52 }
 0x25c   :  { %1499 = vmatpush.bf16.msra.mxu1 %v2247_v55 }
 0x25d   :  { %v1090_v56 = vadd.f32 %v1088_v54, %v2796_v26  ;;  %v2245_v26 = vld [vmem:[#allocation16 + $0x40] sm:$0xff] }
 0x25f   :  { %v1092_v57 = vpack.c.bf16 %v1090_v56, %v1090_v56 }
 0x260   :  { %v1085_v6 = vpop.f32.mrf.mxu3  ;;  %1500 = vmatpush.bf16.msra.mxu1 %v2246_v1 }
 0x261   :  { %1312 = vmatmul.bf16.vlgmr.msrb.gmra.mxu1 %v1092_v57  ;;  %1338 = vmatmul.bf16.vlgmr.msrb.gmra.mxu3 %v1092_v57 }
 0x264   :  { %1501 = vmatpush.bf16.msra.mxu1 %v2245_v26 }
 0x2d8   :  { %v1300_v14 = vpop.f32.mrf.mxu0 }
 0x2d9   :  { %v1301_v18 = vadd.f32 %v1300_v14, %v1127_v17 }
 0x2de   :  { %v1313_v19 = vpop.f32.mrf.mxu1  ;;  %v1326_v63 = vpop.f32.mrf.mxu2 }
 0x2df   :  { %v1314_v16 = vadd.f32 %v1313_v19, %v1301_v18  ;;  %v1327_v24 = vadd.f32 %v1326_v63, %v1128_v21 }
 0x2e0   :  { %v1302_v22 = vpop.f32.mrf.mxu0 }
 0x2e1   :  { %v1343_v0 = vmax.f32 %v1314_v16, 0.0 }
 0x2e3   :  { %v1345_v23 = vadd.f32 %v1343_v0, %v1089_v50 }
 0x2e4   :  { %v1339_v27 = vpop.f32.mrf.mxu3 }
 0x2e5   :  { %v1347_v28 = vpack.c.bf16 %v1345_v23, %v1345_v23  ;;  %v1340_v29 = vadd.f32 %v1339_v27, %v1327_v24 }
 0x2e6   :  { %v1315_v30 = vpop.f32.mrf.mxu1  ;;  %v1328_v31 = vpop.f32.mrf.mxu2 }
 0x2e7   :  { %v1344_v32 = vmax.f32 %v1340_v29, 0.0  ;;  %1489 = vmatmul.bf16.vlgmr.msra.gmra.mxu0 %v1347_v28 }
 0x2e9   :  { %v1346_v33 = vadd.f32 %v1344_v32, %v1090_v56 }
 0x2eb   :  { %v1348_v15 = vpack.c.bf16 %v1346_v33, %v1346_v33 }
 0x2ec   :  { %v1341_v34 = vpop.f32.mrf.mxu3 }
 0x2ed   :  { %1502 = vmatmul.bf16.vlgmr.msra.gmra.mxu1 %v1348_v15 }
 0x364   :  { %v1490_v20 = vpop.f32.mrf.mxu0 }
 0x365   :  { %v1491_v25 = vadd.f32 %v2284_v36, %v1490_v20 }
 0x36a   :  { %v1503_v3 = vpop.f32.mrf.mxu1 }
 0x36b   :  { %v1504_v37 = vadd.f32 %v1503_v3, %v1491_v25 }
 0x36c   :  { %v1492_v39 = vpop.f32.mrf.mxu0 }
 0x36d   :  { %v1507_v40 = vmul.f32 0.5, %v1504_v37 }
 0x36f   :  { %2285 = vtanh.f32 %v1507_v40 }
 0x372   :  { %v1505_v41 = vpop.f32.mrf.mxu1 }
 0x375   :  { %v2286_v43 = vpop.eup %2285 }
 0x376   :  { %v1509_v4 = vmul.f32 0.5, %v2286_v43 }
 0x378   :  { %v1510_v13 = vadd.f32 0.5, %v1509_v4 }
 0x37a   :  { %1511 = vst [vmem:[#allocation17] sm:$0xff] %v1510_v13 }
 0x37b   :  { %1522 = dma.vmem_to_hbm [thread:$0]  %s1518_s16, 128, %s1520_s18, [#allocation4]  }
 0x37c   :  { %2537 = dma.done.wait [#allocation4], 128  }
 0x37d   :  { %2538 = vsyncadd [#allocation4], 4294967168 }
 0x37e   :  { %1527 = vsyncpa [#allocation3], 1 }
 0x37f   :  { %1528 = vsyncpa [#allocation6], 1 }
 0x380   :  { %1529 = vsyncpa [#allocation9], 1 }
 0x381   :  { %1530 = vsyncpa [#allocation12], 1 }
 0x382   :  { %1531 = vsyncpa [#allocation15], 1 }
 0x383   :  { %1532 = vsyncpa [#allocation4], 1 }

</bundles_post_ra>
